<compile_context>
chip_gen: v7x
topology: tpu7x:2x2x1
jax: 0.10.0
libtpu: 0.0.40
codegen_flags: <defaults>
</compile_context>

<pallas_src>
import functools
import math

import numpy as np
import jax
import jax.numpy as jnp
from jax import lax
from jax.experimental import pallas as pl
from jax.experimental.pallas import tpu as pltpu

EPS = 1e-5        # BatchNorm1d default eps
SLOPE = 0.01      # LeakyReLU default negative_slope
ALIGN = 8         # sublane-aligned interior offset inside the padded scratch


def _up_double_conv_kernel(x2_ref, x1_ref, wup_ref, w1_ref, w2_ref,
                           g1_ref, b1_ref, g2_ref, b2_ref,
                           o_ref, pad1, pad2):
    N, L, C2 = x2_ref.shape
    K1, Cin, M = w1_ref.shape
    K2, _, Co = w2_ref.shape
    P1 = (K1 - 1) // 2
    P2 = (K2 - 1) // 2
    A = ALIGN

    # ---- Stage [x2 | upsampled+padded x1] into ONE merged zero-padded scratch
    # ---- and run conv #1 (k=11), writing straight into conv #2's padded scratch.
    def stage_and_conv1(n, carry):
        # Zero only the halo slabs (aligned 8-row blocks), not the whole buffer.
        pad1[n, :A, :] = jnp.zeros((A, Cin), pad1.dtype)
        pad1[n, A + L:, :] = jnp.zeros((A, Cin), pad1.dtype)
        pad2[n, :A, :] = jnp.zeros((A, M), pad2.dtype)
        pad2[n, A + L:, :] = jnp.zeros((A, M), pad2.dtype)

        # torch.cat([x2, x1], dim=1) folded into channel placement of the scratch:
        # x2 -> channels [0, C2), upsampled x1 -> channels [C2, Cin).
        pad1[n, A:A + L, :C2] = x2_ref[n]
        up = jnp.dot(wup_ref[...], x1_ref[n],
                     preferred_element_type=jnp.float32)        # (L, C1) f32
        pad1[n, A:A + L, C2:] = up.astype(pad1.dtype)

        # Conv1d #1: one (L, Cin) @ (Cin, M) MXU matmul per tap (merged channels).
        acc = jnp.zeros((L, M), jnp.float32)
        for t in range(K1):
            s = A - P1 + t
            acc += jnp.dot(pad1[n, s:s + L, :], w1_ref[t],
                           preferred_element_type=jnp.float32)

        # Write the raw conv-1 output directly into conv-2's padded scratch.
        pad2[n, A:A + L, :] = acc.astype(pad2.dtype)
        return carry

    lax.fori_loop(0, N, stage_and_conv1, 0, unroll=True)

    # ---- BatchNorm1d #1 (training-mode batch stats over (N, L), biased variance,
    # ---- f32 math) + LeakyReLU, written back in place into pad2's interior.
    h = pad2[:, A:A + L, :].astype(jnp.float32)                 # (N, L, M)
    mu1 = jnp.mean(h, axis=(0, 1), keepdims=True)
    var1 = jnp.mean(jnp.square(h - mu1), axis=(0, 1), keepdims=True)
    h = (h - mu1) * lax.rsqrt(var1 + EPS) * g1_ref[...] + b1_ref[...]
    h = jnp.where(h > 0, h, SLOPE * h)
    pad2[:, A:A + L, :] = h.astype(pad2.dtype)

    # ---- Conv1d #2 (k=7): raw result goes straight into the (VMEM-resident) output.
    def conv2(n, carry):
        acc = jnp.zeros((L, Co), jnp.float32)
        for t in range(K2):
            s = A - P2 + t
            acc += jnp.dot(pad2[n, s:s + L, :], w2_ref[t],
                           preferred_element_type=jnp.float32)
        o_ref[n] = acc
        return carry

    lax.fori_loop(0, N, conv2, 0, unroll=True)

    # ---- BatchNorm1d #2 + LeakyReLU, applied in place on o_ref.
    y = o_ref[...]                                              # (N, L, Co) f32
    mu2 = jnp.mean(y, axis=(0, 1), keepdims=True)
    var2 = jnp.mean(jnp.square(y - mu2), axis=(0, 1), keepdims=True)
    y = (y - mu2) * lax.rsqrt(var2 + EPS) * g2_ref[...] + b2_ref[...]
    o_ref[...] = jnp.where(y > 0, y, SLOPE * y)


@functools.lru_cache(maxsize=None)
def _upsample_pad_matrix_np(L_in, L_target):
    """W (L_target, L_in) such that W @ x == F.pad(Upsample(x), [d//2, d - d//2])
    for Upsample(scale_factor=2, mode='linear', align_corners=True). Zero rows of
    W realize the zero padding. Cached: depends only on (L_in, L_target)."""
    L_up = 2 * L_in
    diff = L_target - L_up
    assert diff >= 0, "this kernel assumes x2 is at least as long as upsampled x1"
    left = diff // 2
    W = np.zeros((L_target, L_in), dtype=np.float32)
    for j in range(L_up):
        coord = 0.0 if L_up == 1 else j * (L_in - 1) / (L_up - 1)
        i0 = int(np.floor(coord))
        frac = coord - i0
        i1 = min(i0 + 1, L_in - 1)
        W[left + j, i0] += 1.0 - frac
        W[left + j, i1] += frac
    return W


def init_up_params(key, in_channels, out_channels):
    """Deterministic synthetic init mirroring the module's shapes.
    Conv1d weights ~ U(-1/sqrt(fan_in), 1/sqrt(fan_in)); BN gamma=1, beta=0.
    Conv #1 weight is stored pre-concatenated: input-channel order [x2 | x1],
    matching torch.cat([x2, x1], dim=1)."""
    mid = in_channels // 2
    k1, k2 = jax.random.split(key)
    b1 = 1.0 / math.sqrt(in_channels * 11)
    b2 = 1.0 / math.sqrt(mid * 7)
    # stored as (kernel_tap, in_ch, out_ch)
    w1 = jax.random.uniform(k1, (11, in_channels, mid), jnp.float32, -b1, b1)
    w2 = jax.random.uniform(k2, (7, mid, out_channels), jnp.float32, -b2, b2)
    g1 = jnp.ones((1, 1, mid), jnp.float32)
    bt1 = jnp.zeros((1, 1, mid), jnp.float32)
    g2 = jnp.ones((1, 1, out_channels), jnp.float32)
    bt2 = jnp.zeros((1, 1, out_channels), jnp.float32)
    return w1, w2, g1, bt1, g2, bt2


@jax.jit
def up_forward(x1, x2, params):
    """x1: (N, C1, L1) deep feature, x2: (N, C2, L2) skip connection (NCL).
    Returns (N, Cout, L2)."""
    N, C1, L1 = x1.shape
    _, C2, L2 = x2.shape
    w1, w2, g1, b1, g2, b2 = params
    K1, Cin, mid = w1.shape
    K2, _, Cout = w2.shape
    assert Cin == C1 + C2
    assert (K1 - 1) // 2 <= ALIGN and (K2 - 1) // 2 <= ALIGN

    # NCL -> NLC layout change fused with the bf16 downcast of all MXU operands
    # (BatchNorm / LeakyReLU stay in f32 inside the kernel).
    x1_nlc = jnp.transpose(x1, (0, 2, 1)).astype(jnp.bfloat16)
    x2_nlc = jnp.transpose(x2, (0, 2, 1)).astype(jnp.bfloat16)
    wup = jnp.asarray(_upsample_pad_matrix_np(L1, L2), dtype=jnp.bfloat16)  # (L2, L1)

    Lp = L2 + 2 * ALIGN
    vmem = pl.BlockSpec(memory_space=pltpu.MemorySpace.VMEM)
    out = pl.pallas_call(
        _up_double_conv_kernel,
        out_shape=jax.ShapeDtypeStruct((N, L2, Cout), jnp.float32),
        in_specs=[vmem] * 9,
        out_specs=vmem,
        scratch_shapes=[
            pltpu.VMEM((N, Lp, Cin), jnp.bfloat16),   # merged padded conv1 input (x2|up(x1))
            pltpu.VMEM((N, Lp, mid), jnp.bfloat16),   # padded conv2 input
        ],
        compiler_params=pltpu.CompilerParams(
            vmem_limit_bytes=32 * 1024 * 1024,        # fits v7x's 64 MiB VMEM budget
        ),
    )(x2_nlc, x1_nlc, wup,
      w1.astype(jnp.bfloat16), w2.astype(jnp.bfloat16),
      g1, b1, g2, b2)
    return jnp.transpose(out, (0, 2, 1))


if __name__ == "__main__":
    key = jax.random.PRNGKey(0)
    kx1, kx2, kp = jax.random.split(key, 3)

    # Up(in_channels=8, out_channels=4, bilinear=True):
    #   x1: deep feature (N, 4, 7)  -> upsampled to length 14, zero-padded to 16
    #   x2: skip feature (N, 4, 16)
    N, C1, L1 = 2, 4, 7
    C2, L2 = 4, 16
    in_channels, out_channels = C1 + C2, 4

    x1 = jax.random.normal(kx1, (N, C1, L1), jnp.float32)
    x2 = jax.random.normal(kx2, (N, C2, L2), jnp.float32)
    params = init_up_params(kp, in_channels, out_channels)

    y = up_forward(x1, x2, params)
    jax.block_until_ready(y)
    assert y.shape == (N, out_channels, L2)
    assert bool(jnp.all(jnp.isfinite(y)))
    print("KERNEL_OK")
</pallas_src>

<mosaic_0001>
module attributes {stable_mosaic.version = 11 : i64} {
  func.func @_up_double_conv_kernel(%arg0: memref<2x16x4xbf16, #tpu.memory_space<vmem>>, %arg1: memref<2x7x4xbf16, #tpu.memory_space<vmem>>, %arg2: memref<16x7xbf16, #tpu.memory_space<vmem>>, %arg3: memref<11x8x4xbf16, #tpu.memory_space<vmem>>, %arg4: memref<7x4x4xbf16, #tpu.memory_space<vmem>>, %arg5: memref<1x1x4xf32, #tpu.memory_space<vmem>>, %arg6: memref<1x1x4xf32, #tpu.memory_space<vmem>>, %arg7: memref<1x1x4xf32, #tpu.memory_space<vmem>>, %arg8: memref<1x1x4xf32, #tpu.memory_space<vmem>>, %arg9: memref<2x16x4xf32, #tpu.memory_space<vmem>>, %arg10: memref<2x32x8xbf16, #tpu.memory_space<vmem>>, %arg11: memref<2x32x4xbf16, #tpu.memory_space<vmem>>) attributes {dimension_semantics = [], scalar_prefetch = 0 : i64, scratch_operands = 2 : i64, tpu.core_type = #tpu.core_type<tc>} {
    %c0_i32 = arith.constant 0 : i32
    %cst = arith.constant 0.000000e+00 : bf16
    %0 = vector.broadcast %cst : bf16 to vector<8x8xbf16>
    %1 = arith.index_cast %c0_i32 : i32 to index
    %c0 = arith.constant 0 : index
    %c0_0 = arith.constant 0 : index
    %2 = vector.load %arg10[%1, %c0, %c0_0] : memref<2x32x8xbf16, #tpu.memory_space<vmem>>, vector<1x8x8xbf16>
    %3 = vector.shape_cast %2 : vector<1x8x8xbf16> to vector<8x8xbf16>
    %4 = vector.shape_cast %0 : vector<8x8xbf16> to vector<1x8x8xbf16>
    tpu.vector_store %arg10[%1, %c0, %c0_0], %4 {strides = array<i32>} : memref<2x32x8xbf16, #tpu.memory_space<vmem>>, vector<1x8x8xbf16>,
    %cst_1 = arith.constant 0.000000e+00 : bf16
    %5 = vector.broadcast %cst_1 : bf16 to vector<8x8xbf16>
    %6 = arith.index_cast %c0_i32 : i32 to index
    %c24 = arith.constant 24 : index
    %c0_2 = arith.constant 0 : index
    %7 = vector.load %arg10[%6, %c24, %c0_2] : memref<2x32x8xbf16, #tpu.memory_space<vmem>>, vector<1x8x8xbf16>
    %8 = vector.shape_cast %7 : vector<1x8x8xbf16> to vector<8x8xbf16>
    %9 = vector.shape_cast %5 : vector<8x8xbf16> to vector<1x8x8xbf16>
    tpu.vector_store %arg10[%6, %c24, %c0_2], %9 {strides = array<i32>} : memref<2x32x8xbf16, #tpu.memory_space<vmem>>, vector<1x8x8xbf16>,
    %cst_3 = arith.constant 0.000000e+00 : bf16
    %10 = vector.broadcast %cst_3 : bf16 to vector<8x4xbf16>
    %11 = arith.index_cast %c0_i32 : i32 to index
    %c0_4 = arith.constant 0 : index
    %c0_5 = arith.constant 0 : index
    %12 = vector.load %arg11[%11, %c0_4, %c0_5] : memref<2x32x4xbf16, #tpu.memory_space<vmem>>, vector<1x8x4xbf16>
    %13 = vector.shape_cast %12 : vector<1x8x4xbf16> to vector<8x4xbf16>
    %14 = vector.shape_cast %10 : vector<8x4xbf16> to vector<1x8x4xbf16>
    tpu.vector_store %arg11[%11, %c0_4, %c0_5], %14 {strides = array<i32>} : memref<2x32x4xbf16, #tpu.memory_space<vmem>>, vector<1x8x4xbf16>,
    %cst_6 = arith.constant 0.000000e+00 : bf16
    %15 = vector.broadcast %cst_6 : bf16 to vector<8x4xbf16>
    %16 = arith.index_cast %c0_i32 : i32 to index
    %c24_7 = arith.constant 24 : index
    %c0_8 = arith.constant 0 : index
    %17 = vector.load %arg11[%16, %c24_7, %c0_8] : memref<2x32x4xbf16, #tpu.memory_space<vmem>>, vector<1x8x4xbf16>
    %18 = vector.shape_cast %17 : vector<1x8x4xbf16> to vector<8x4xbf16>
    %19 = vector.shape_cast %15 : vector<8x4xbf16> to vector<1x8x4xbf16>
    tpu.vector_store %arg11[%16, %c24_7, %c0_8], %19 {strides = array<i32>} : memref<2x32x4xbf16, #tpu.memory_space<vmem>>, vector<1x8x4xbf16>,
    %20 = arith.index_cast %c0_i32 : i32 to index
    %c0_9 = arith.constant 0 : index
    %c0_10 = arith.constant 0 : index
    %21 = vector.load %arg0[%20, %c0_9, %c0_10] : memref<2x16x4xbf16, #tpu.memory_space<vmem>>, vector<1x16x4xbf16>
    %22 = vector.shape_cast %21 : vector<1x16x4xbf16> to vector<16x4xbf16>
    %23 = arith.index_cast %c0_i32 : i32 to index
    %c8 = arith.constant 8 : index
    %c0_11 = arith.constant 0 : index
    %24 = vector.load %arg10[%23, %c8, %c0_11] : memref<2x32x8xbf16, #tpu.memory_space<vmem>>, vector<1x16x4xbf16>
    %25 = vector.shape_cast %24 : vector<1x16x4xbf16> to vector<16x4xbf16>
    %26 = vector.shape_cast %22 : vector<16x4xbf16> to vector<1x16x4xbf16>
    tpu.vector_store %arg10[%23, %c8, %c0_11], %26 {strides = array<i32>} : memref<2x32x8xbf16, #tpu.memory_space<vmem>>, vector<1x16x4xbf16>,
    %c0_12 = arith.constant 0 : index
    %c0_13 = arith.constant 0 : index
    %27 = vector.load %arg2[%c0_12, %c0_13] : memref<16x7xbf16, #tpu.memory_space<vmem>>, vector<16x7xbf16>
    %28 = arith.index_cast %c0_i32 : i32 to index
    %c0_14 = arith.constant 0 : index
    %c0_15 = arith.constant 0 : index
    %29 = vector.load %arg1[%28, %c0_14, %c0_15] : memref<2x7x4xbf16, #tpu.memory_space<vmem>>, vector<1x7x4xbf16>
    %30 = vector.shape_cast %29 : vector<1x7x4xbf16> to vector<7x4xbf16>
    %cst_16 = arith.constant dense<0.000000e+00> : vector<16x4xf32>
    %31 = tpu.matmul %27, %30, %cst_16 {dimension_numbers = #tpu.dot_dimension_numbers<[1], [0], [0], [1], [0, 0, 1, 1], [], []>} : vector<16x7xbf16>, vector<7x4xbf16>, vector<16x4xf32> -> vector<16x4xf32>
    %32 = arith.truncf %31 : vector<16x4xf32> to vector<16x4xbf16>
    %33 = arith.index_cast %c0_i32 : i32 to index
    %c8_17 = arith.constant 8 : index
    %c4 = arith.constant 4 : index
    %34 = vector.load %arg10[%33, %c8_17, %c4] : memref<2x32x8xbf16, #tpu.memory_space<vmem>>, vector<1x16x4xbf16>
    %35 = vector.shape_cast %34 : vector<1x16x4xbf16> to vector<16x4xbf16>
    %36 = vector.shape_cast %32 : vector<16x4xbf16> to vector<1x16x4xbf16>
    tpu.vector_store %arg10[%33, %c8_17, %c4], %36 {strides = array<i32>} : memref<2x32x8xbf16, #tpu.memory_space<vmem>>, vector<1x16x4xbf16>,
    %cst_18 = arith.constant 0.000000e+00 : f32
    %37 = vector.broadcast %cst_18 : f32 to vector<16x4xf32>
    %38 = arith.index_cast %c0_i32 : i32 to index
    %c3 = arith.constant 3 : index
    %c0_19 = arith.constant 0 : index
    %39 = vector.load %arg10[%38, %c3, %c0_19] : memref<2x32x8xbf16, #tpu.memory_space<vmem>>, vector<1x16x8xbf16>
    %40 = vector.shape_cast %39 : vector<1x16x8xbf16> to vector<16x8xbf16>
    %c0_20 = arith.constant 0 : index
    %c0_21 = arith.constant 0 : index
    %c0_22 = arith.constant 0 : index
    %41 = vector.load %arg3[%c0_20, %c0_21, %c0_22] : memref<11x8x4xbf16, #tpu.memory_space<vmem>>, vector<1x8x4xbf16>
    %42 = vector.shape_cast %41 : vector<1x8x4xbf16> to vector<8x4xbf16>
    %cst_23 = arith.constant dense<0.000000e+00> : vector<16x4xf32>
    %43 = tpu.matmul %40, %42, %cst_23 {dimension_numbers = #tpu.dot_dimension_numbers<[1], [0], [0], [1], [0, 0, 1, 1], [], []>} : vector<16x8xbf16>, vector<8x4xbf16>, vector<16x4xf32> -> vector<16x4xf32>
    %44 = arith.addf %37, %43 : vector<16x4xf32>
    %45 = arith.index_cast %c0_i32 : i32 to index
    %c4_24 = arith.constant 4 : index
    %c0_25 = arith.constant 0 : index
    %46 = vector.load %arg10[%45, %c4_24, %c0_25] : memref<2x32x8xbf16, #tpu.memory_space<vmem>>, vector<1x16x8xbf16>
    %47 = vector.shape_cast %46 : vector<1x16x8xbf16> to vector<16x8xbf16>
    %c1 = arith.constant 1 : index
    %c0_26 = arith.constant 0 : index
    %c0_27 = arith.constant 0 : index
    %48 = vector.load %arg3[%c1, %c0_26, %c0_27] : memref<11x8x4xbf16, #tpu.memory_space<vmem>>, vector<1x8x4xbf16>
    %49 = vector.shape_cast %48 : vector<1x8x4xbf16> to vector<8x4xbf16>
    %cst_28 = arith.constant dense<0.000000e+00> : vector<16x4xf32>
    %50 = tpu.matmul %47, %49, %cst_28 {dimension_numbers = #tpu.dot_dimension_numbers<[1], [0], [0], [1], [0, 0, 1, 1], [], []>} : vector<16x8xbf16>, vector<8x4xbf16>, vector<16x4xf32> -> vector<16x4xf32>
    %51 = arith.addf %44, %50 : vector<16x4xf32>
    %52 = arith.index_cast %c0_i32 : i32 to index
    %c5 = arith.constant 5 : index
    %c0_29 = arith.constant 0 : index
    %53 = vector.load %arg10[%52, %c5, %c0_29] : memref<2x32x8xbf16, #tpu.memory_space<vmem>>, vector<1x16x8xbf16>
    %54 = vector.shape_cast %53 : vector<1x16x8xbf16> to vector<16x8xbf16>
    %c2 = arith.constant 2 : index
    %c0_30 = arith.constant 0 : index
    %c0_31 = arith.constant 0 : index
    %55 = vector.load %arg3[%c2, %c0_30, %c0_31] : memref<11x8x4xbf16, #tpu.memory_space<vmem>>, vector<1x8x4xbf16>
    %56 = vector.shape_cast %55 : vector<1x8x4xbf16> to vector<8x4xbf16>
    %cst_32 = arith.constant dense<0.000000e+00> : vector<16x4xf32>
    %57 = tpu.matmul %54, %56, %cst_32 {dimension_numbers = #tpu.dot_dimension_numbers<[1], [0], [0], [1], [0, 0, 1, 1], [], []>} : vector<16x8xbf16>, vector<8x4xbf16>, vector<16x4xf32> -> vector<16x4xf32>
    %58 = arith.addf %51, %57 : vector<16x4xf32>
    %59 = arith.index_cast %c0_i32 : i32 to index
    %c6 = arith.constant 6 : index
    %c0_33 = arith.constant 0 : index
    %60 = vector.load %arg10[%59, %c6, %c0_33] : memref<2x32x8xbf16, #tpu.memory_space<vmem>>, vector<1x16x8xbf16>
    %61 = vector.shape_cast %60 : vector<1x16x8xbf16> to vector<16x8xbf16>
    %c3_34 = arith.constant 3 : index
    %c0_35 = arith.constant 0 : index
    %c0_36 = arith.constant 0 : index
    %62 = vector.load %arg3[%c3_34, %c0_35, %c0_36] : memref<11x8x4xbf16, #tpu.memory_space<vmem>>, vector<1x8x4xbf16>
    %63 = vector.shape_cast %62 : vector<1x8x4xbf16> to vector<8x4xbf16>
    %cst_37 = arith.constant dense<0.000000e+00> : vector<16x4xf32>
    %64 = tpu.matmul %61, %63, %cst_37 {dimension_numbers = #tpu.dot_dimension_numbers<[1], [0], [0], [1], [0, 0, 1, 1], [], []>} : vector<16x8xbf16>, vector<8x4xbf16>, vector<16x4xf32> -> vector<16x4xf32>
    %65 = arith.addf %58, %64 : vector<16x4xf32>
    %66 = arith.index_cast %c0_i32 : i32 to index
    %c7 = arith.constant 7 : index
    %c0_38 = arith.constant 0 : index
    %67 = vector.load %arg10[%66, %c7, %c0_38] : memref<2x32x8xbf16, #tpu.memory_space<vmem>>, vector<1x16x8xbf16>
    %68 = vector.shape_cast %67 : vector<1x16x8xbf16> to vector<16x8xbf16>
    %c4_39 = arith.constant 4 : index
    %c0_40 = arith.constant 0 : index
    %c0_41 = arith.constant 0 : index
    %69 = vector.load %arg3[%c4_39, %c0_40, %c0_41] : memref<11x8x4xbf16, #tpu.memory_space<vmem>>, vector<1x8x4xbf16>
    %70 = vector.shape_cast %69 : vector<1x8x4xbf16> to vector<8x4xbf16>
    %cst_42 = arith.constant dense<0.000000e+00> : vector<16x4xf32>
    %71 = tpu.matmul %68, %70, %cst_42 {dimension_numbers = #tpu.dot_dimension_numbers<[1], [0], [0], [1], [0, 0, 1, 1], [], []>} : vector<16x8xbf16>, vector<8x4xbf16>, vector<16x4xf32> -> vector<16x4xf32>
    %72 = arith.addf %65, %71 : vector<16x4xf32>
    %73 = arith.index_cast %c0_i32 : i32 to index
    %c8_43 = arith.constant 8 : index
    %c0_44 = arith.constant 0 : index
    %74 = vector.load %arg10[%73, %c8_43, %c0_44] : memref<2x32x8xbf16, #tpu.memory_space<vmem>>, vector<1x16x8xbf16>
    %75 = vector.shape_cast %74 : vector<1x16x8xbf16> to vector<16x8xbf16>
    %c5_45 = arith.constant 5 : index
    %c0_46 = arith.constant 0 : index
    %c0_47 = arith.constant 0 : index
    %76 = vector.load %arg3[%c5_45, %c0_46, %c0_47] : memref<11x8x4xbf16, #tpu.memory_space<vmem>>, vector<1x8x4xbf16>
    %77 = vector.shape_cast %76 : vector<1x8x4xbf16> to vector<8x4xbf16>
    %cst_48 = arith.constant dense<0.000000e+00> : vector<16x4xf32>
    %78 = tpu.matmul %75, %77, %cst_48 {dimension_numbers = #tpu.dot_dimension_numbers<[1], [0], [0], [1], [0, 0, 1, 1], [], []>} : vector<16x8xbf16>, vector<8x4xbf16>, vector<16x4xf32> -> vector<16x4xf32>
    %79 = arith.addf %72, %78 : vector<16x4xf32>
    %80 = arith.index_cast %c0_i32 : i32 to index
    %c9 = arith.constant 9 : index
    %c0_49 = arith.constant 0 : index
    %81 = vector.load %arg10[%80, %c9, %c0_49] : memref<2x32x8xbf16, #tpu.memory_space<vmem>>, vector<1x16x8xbf16>
    %82 = vector.shape_cast %81 : vector<1x16x8xbf16> to vector<16x8xbf16>
    %c6_50 = arith.constant 6 : index
    %c0_51 = arith.constant 0 : index
    %c0_52 = arith.constant 0 : index
    %83 = vector.load %arg3[%c6_50, %c0_51, %c0_52] : memref<11x8x4xbf16, #tpu.memory_space<vmem>>, vector<1x8x4xbf16>
    %84 = vector.shape_cast %83 : vector<1x8x4xbf16> to vector<8x4xbf16>
    %cst_53 = arith.constant dense<0.000000e+00> : vector<16x4xf32>
    %85 = tpu.matmul %82, %84, %cst_53 {dimension_numbers = #tpu.dot_dimension_numbers<[1], [0], [0], [1], [0, 0, 1, 1], [], []>} : vector<16x8xbf16>, vector<8x4xbf16>, vector<16x4xf32> -> vector<16x4xf32>
    %86 = arith.addf %79, %85 : vector<16x4xf32>
    %87 = arith.index_cast %c0_i32 : i32 to index
    %c10 = arith.constant 10 : index
    %c0_54 = arith.constant 0 : index
    %88 = vector.load %arg10[%87, %c10, %c0_54] : memref<2x32x8xbf16, #tpu.memory_space<vmem>>, vector<1x16x8xbf16>
    %89 = vector.shape_cast %88 : vector<1x16x8xbf16> to vector<16x8xbf16>
    %c7_55 = arith.constant 7 : index
    %c0_56 = arith.constant 0 : index
    %c0_57 = arith.constant 0 : index
    %90 = vector.load %arg3[%c7_55, %c0_56, %c0_57] : memref<11x8x4xbf16, #tpu.memory_space<vmem>>, vector<1x8x4xbf16>
    %91 = vector.shape_cast %90 : vector<1x8x4xbf16> to vector<8x4xbf16>
    %cst_58 = arith.constant dense<0.000000e+00> : vector<16x4xf32>
    %92 = tpu.matmul %89, %91, %cst_58 {dimension_numbers = #tpu.dot_dimension_numbers<[1], [0], [0], [1], [0, 0, 1, 1], [], []>} : vector<16x8xbf16>, vector<8x4xbf16>, vector<16x4xf32> -> vector<16x4xf32>
    %93 = arith.addf %86, %92 : vector<16x4xf32>
    %94 = arith.index_cast %c0_i32 : i32 to index
    %c11 = arith.constant 11 : index
    %c0_59 = arith.constant 0 : index
    %95 = vector.load %arg10[%94, %c11, %c0_59] : memref<2x32x8xbf16, #tpu.memory_space<vmem>>, vector<1x16x8xbf16>
    %96 = vector.shape_cast %95 : vector<1x16x8xbf16> to vector<16x8xbf16>
    %c8_60 = arith.constant 8 : index
    %c0_61 = arith.constant 0 : index
    %c0_62 = arith.constant 0 : index
    %97 = vector.load %arg3[%c8_60, %c0_61, %c0_62] : memref<11x8x4xbf16, #tpu.memory_space<vmem>>, vector<1x8x4xbf16>
    %98 = vector.shape_cast %97 : vector<1x8x4xbf16> to vector<8x4xbf16>
    %cst_63 = arith.constant dense<0.000000e+00> : vector<16x4xf32>
    %99 = tpu.matmul %96, %98, %cst_63 {dimension_numbers = #tpu.dot_dimension_numbers<[1], [0], [0], [1], [0, 0, 1, 1], [], []>} : vector<16x8xbf16>, vector<8x4xbf16>, vector<16x4xf32> -> vector<16x4xf32>
    %100 = arith.addf %93, %99 : vector<16x4xf32>
    %101 = arith.index_cast %c0_i32 : i32 to index
    %c12 = arith.constant 12 : index
    %c0_64 = arith.constant 0 : index
    %102 = vector.load %arg10[%101, %c12, %c0_64] : memref<2x32x8xbf16, #tpu.memory_space<vmem>>, vector<1x16x8xbf16>
    %103 = vector.shape_cast %102 : vector<1x16x8xbf16> to vector<16x8xbf16>
    %c9_65 = arith.constant 9 : index
    %c0_66 = arith.constant 0 : index
    %c0_67 = arith.constant 0 : index
    %104 = vector.load %arg3[%c9_65, %c0_66, %c0_67] : memref<11x8x4xbf16, #tpu.memory_space<vmem>>, vector<1x8x4xbf16>
    %105 = vector.shape_cast %104 : vector<1x8x4xbf16> to vector<8x4xbf16>
    %cst_68 = arith.constant dense<0.000000e+00> : vector<16x4xf32>
    %106 = tpu.matmul %103, %105, %cst_68 {dimension_numbers = #tpu.dot_dimension_numbers<[1], [0], [0], [1], [0, 0, 1, 1], [], []>} : vector<16x8xbf16>, vector<8x4xbf16>, vector<16x4xf32> -> vector<16x4xf32>
    %107 = arith.addf %100, %106 : vector<16x4xf32>
    %108 = arith.index_cast %c0_i32 : i32 to index
    %c13 = arith.constant 13 : index
    %c0_69 = arith.constant 0 : index
    %109 = vector.load %arg10[%108, %c13, %c0_69] : memref<2x32x8xbf16, #tpu.memory_space<vmem>>, vector<1x16x8xbf16>
    %110 = vector.shape_cast %109 : vector<1x16x8xbf16> to vector<16x8xbf16>
    %c10_70 = arith.constant 10 : index
    %c0_71 = arith.constant 0 : index
    %c0_72 = arith.constant 0 : index
    %111 = vector.load %arg3[%c10_70, %c0_71, %c0_72] : memref<11x8x4xbf16, #tpu.memory_space<vmem>>, vector<1x8x4xbf16>
    %112 = vector.shape_cast %111 : vector<1x8x4xbf16> to vector<8x4xbf16>
    %cst_73 = arith.constant dense<0.000000e+00> : vector<16x4xf32>
    %113 = tpu.matmul %110, %112, %cst_73 {dimension_numbers = #tpu.dot_dimension_numbers<[1], [0], [0], [1], [0, 0, 1, 1], [], []>} : vector<16x8xbf16>, vector<8x4xbf16>, vector<16x4xf32> -> vector<16x4xf32>
    %114 = arith.addf %107, %113 : vector<16x4xf32>
    %115 = arith.truncf %114 : vector<16x4xf32> to vector<16x4xbf16>
    %116 = arith.index_cast %c0_i32 : i32 to index
    %c8_74 = arith.constant 8 : index
    %c0_75 = arith.constant 0 : index
    %117 = vector.load %arg11[%116, %c8_74, %c0_75] : memref<2x32x4xbf16, #tpu.memory_space<vmem>>, vector<1x16x4xbf16>
    %118 = vector.shape_cast %117 : vector<1x16x4xbf16> to vector<16x4xbf16>
    %119 = vector.shape_cast %115 : vector<16x4xbf16> to vector<1x16x4xbf16>
    tpu.vector_store %arg11[%116, %c8_74, %c0_75], %119 {strides = array<i32>} : memref<2x32x4xbf16, #tpu.memory_space<vmem>>, vector<1x16x4xbf16>,
    %c1_i32 = arith.constant 1 : i32
    %cst_76 = arith.constant 0.000000e+00 : bf16
    %120 = vector.broadcast %cst_76 : bf16 to vector<8x8xbf16>
    %121 = arith.index_cast %c1_i32 : i32 to index
    %c0_77 = arith.constant 0 : index
    %c0_78 = arith.constant 0 : index
    %122 = vector.load %arg10[%121, %c0_77, %c0_78] : memref<2x32x8xbf16, #tpu.memory_space<vmem>>, vector<1x8x8xbf16>
    %123 = vector.shape_cast %122 : vector<1x8x8xbf16> to vector<8x8xbf16>
    %124 = vector.shape_cast %120 : vector<8x8xbf16> to vector<1x8x8xbf16>
    tpu.vector_store %arg10[%121, %c0_77, %c0_78], %124 {strides = array<i32>} : memref<2x32x8xbf16, #tpu.memory_space<vmem>>, vector<1x8x8xbf16>,
    %cst_79 = arith.constant 0.000000e+00 : bf16
    %125 = vector.broadcast %cst_79 : bf16 to vector<8x8xbf16>
    %126 = arith.index_cast %c1_i32 : i32 to index
    %c24_80 = arith.constant 24 : index
    %c0_81 = arith.constant 0 : index
    %127 = vector.load %arg10[%126, %c24_80, %c0_81] : memref<2x32x8xbf16, #tpu.memory_space<vmem>>, vector<1x8x8xbf16>
    %128 = vector.shape_cast %127 : vector<1x8x8xbf16> to vector<8x8xbf16>
    %129 = vector.shape_cast %125 : vector<8x8xbf16> to vector<1x8x8xbf16>
    tpu.vector_store %arg10[%126, %c24_80, %c0_81], %129 {strides = array<i32>} : memref<2x32x8xbf16, #tpu.memory_space<vmem>>, vector<1x8x8xbf16>,
    %cst_82 = arith.constant 0.000000e+00 : bf16
    %130 = vector.broadcast %cst_82 : bf16 to vector<8x4xbf16>
    %131 = arith.index_cast %c1_i32 : i32 to index
    %c0_83 = arith.constant 0 : index
    %c0_84 = arith.constant 0 : index
    %132 = vector.load %arg11[%131, %c0_83, %c0_84] : memref<2x32x4xbf16, #tpu.memory_space<vmem>>, vector<1x8x4xbf16>
    %133 = vector.shape_cast %132 : vector<1x8x4xbf16> to vector<8x4xbf16>
    %134 = vector.shape_cast %130 : vector<8x4xbf16> to vector<1x8x4xbf16>
    tpu.vector_store %arg11[%131, %c0_83, %c0_84], %134 {strides = array<i32>} : memref<2x32x4xbf16, #tpu.memory_space<vmem>>, vector<1x8x4xbf16>,
    %cst_85 = arith.constant 0.000000e+00 : bf16
    %135 = vector.broadcast %cst_85 : bf16 to vector<8x4xbf16>
    %136 = arith.index_cast %c1_i32 : i32 to index
    %c24_86 = arith.constant 24 : index
    %c0_87 = arith.constant 0 : index
    %137 = vector.load %arg11[%136, %c24_86, %c0_87] : memref<2x32x4xbf16, #tpu.memory_space<vmem>>, vector<1x8x4xbf16>
    %138 = vector.shape_cast %137 : vector<1x8x4xbf16> to vector<8x4xbf16>
    %139 = vector.shape_cast %135 : vector<8x4xbf16> to vector<1x8x4xbf16>
    tpu.vector_store %arg11[%136, %c24_86, %c0_87], %139 {strides = array<i32>} : memref<2x32x4xbf16, #tpu.memory_space<vmem>>, vector<1x8x4xbf16>,
    %140 = arith.index_cast %c1_i32 : i32 to index
    %c0_88 = arith.constant 0 : index
    %c0_89 = arith.constant 0 : index
    %141 = vector.load %arg0[%140, %c0_88, %c0_89] : memref<2x16x4xbf16, #tpu.memory_space<vmem>>, vector<1x16x4xbf16>
    %142 = vector.shape_cast %141 : vector<1x16x4xbf16> to vector<16x4xbf16>
    %143 = arith.index_cast %c1_i32 : i32 to index
    %c8_90 = arith.constant 8 : index
    %c0_91 = arith.constant 0 : index
    %144 = vector.load %arg10[%143, %c8_90, %c0_91] : memref<2x32x8xbf16, #tpu.memory_space<vmem>>, vector<1x16x4xbf16>
    %145 = vector.shape_cast %144 : vector<1x16x4xbf16> to vector<16x4xbf16>
    %146 = vector.shape_cast %142 : vector<16x4xbf16> to vector<1x16x4xbf16>
    tpu.vector_store %arg10[%143, %c8_90, %c0_91], %146 {strides = array<i32>} : memref<2x32x8xbf16, #tpu.memory_space<vmem>>, vector<1x16x4xbf16>,
    %c0_92 = arith.constant 0 : index
    %c0_93 = arith.constant 0 : index
    %147 = vector.load %arg2[%c0_92, %c0_93] : memref<16x7xbf16, #tpu.memory_space<vmem>>, vector<16x7xbf16>
    %148 = arith.index_cast %c1_i32 : i32 to index
    %c0_94 = arith.constant 0 : index
    %c0_95 = arith.constant 0 : index
    %149 = vector.load %arg1[%148, %c0_94, %c0_95] : memref<2x7x4xbf16, #tpu.memory_space<vmem>>, vector<1x7x4xbf16>
    %150 = vector.shape_cast %149 : vector<1x7x4xbf16> to vector<7x4xbf16>
    %cst_96 = arith.constant dense<0.000000e+00> : vector<16x4xf32>
    %151 = tpu.matmul %147, %150, %cst_96 {dimension_numbers = #tpu.dot_dimension_numbers<[1], [0], [0], [1], [0, 0, 1, 1], [], []>} : vector<16x7xbf16>, vector<7x4xbf16>, vector<16x4xf32> -> vector<16x4xf32>
    %152 = arith.truncf %151 : vector<16x4xf32> to vector<16x4xbf16>
    %153 = arith.index_cast %c1_i32 : i32 to index
    %c8_97 = arith.constant 8 : index
    %c4_98 = arith.constant 4 : index
    %154 = vector.load %arg10[%153, %c8_97, %c4_98] : memref<2x32x8xbf16, #tpu.memory_space<vmem>>, vector<1x16x4xbf16>
    %155 = vector.shape_cast %154 : vector<1x16x4xbf16> to vector<16x4xbf16>
    %156 = vector.shape_cast %152 : vector<16x4xbf16> to vector<1x16x4xbf16>
    tpu.vector_store %arg10[%153, %c8_97, %c4_98], %156 {strides = array<i32>} : memref<2x32x8xbf16, #tpu.memory_space<vmem>>, vector<1x16x4xbf16>,
    %cst_99 = arith.constant 0.000000e+00 : f32
    %157 = vector.broadcast %cst_99 : f32 to vector<16x4xf32>
    %158 = arith.index_cast %c1_i32 : i32 to index
    %c3_100 = arith.constant 3 : index
    %c0_101 = arith.constant 0 : index
    %159 = vector.load %arg10[%158, %c3_100, %c0_101] : memref<2x32x8xbf16, #tpu.memory_space<vmem>>, vector<1x16x8xbf16>
    %160 = vector.shape_cast %159 : vector<1x16x8xbf16> to vector<16x8xbf16>
    %c0_102 = arith.constant 0 : index
    %c0_103 = arith.constant 0 : index
    %c0_104 = arith.constant 0 : index
    %161 = vector.load %arg3[%c0_102, %c0_103, %c0_104] : memref<11x8x4xbf16, #tpu.memory_space<vmem>>, vector<1x8x4xbf16>
    %162 = vector.shape_cast %161 : vector<1x8x4xbf16> to vector<8x4xbf16>
    %cst_105 = arith.constant dense<0.000000e+00> : vector<16x4xf32>
    %163 = tpu.matmul %160, %162, %cst_105 {dimension_numbers = #tpu.dot_dimension_numbers<[1], [0], [0], [1], [0, 0, 1, 1], [], []>} : vector<16x8xbf16>, vector<8x4xbf16>, vector<16x4xf32> -> vector<16x4xf32>
    %164 = arith.addf %157, %163 : vector<16x4xf32>
    %165 = arith.index_cast %c1_i32 : i32 to index
    %c4_106 = arith.constant 4 : index
    %c0_107 = arith.constant 0 : index
    %166 = vector.load %arg10[%165, %c4_106, %c0_107] : memref<2x32x8xbf16, #tpu.memory_space<vmem>>, vector<1x16x8xbf16>
    %167 = vector.shape_cast %166 : vector<1x16x8xbf16> to vector<16x8xbf16>
    %c1_108 = arith.constant 1 : index
    %c0_109 = arith.constant 0 : index
    %c0_110 = arith.constant 0 : index
    %168 = vector.load %arg3[%c1_108, %c0_109, %c0_110] : memref<11x8x4xbf16, #tpu.memory_space<vmem>>, vector<1x8x4xbf16>
    %169 = vector.shape_cast %168 : vector<1x8x4xbf16> to vector<8x4xbf16>
    %cst_111 = arith.constant dense<0.000000e+00> : vector<16x4xf32>
    %170 = tpu.matmul %167, %169, %cst_111 {dimension_numbers = #tpu.dot_dimension_numbers<[1], [0], [0], [1], [0, 0, 1, 1], [], []>} : vector<16x8xbf16>, vector<8x4xbf16>, vector<16x4xf32> -> vector<16x4xf32>
    %171 = arith.addf %164, %170 : vector<16x4xf32>
    %172 = arith.index_cast %c1_i32 : i32 to index
    %c5_112 = arith.constant 5 : index
    %c0_113 = arith.constant 0 : index
    %173 = vector.load %arg10[%172, %c5_112, %c0_113] : memref<2x32x8xbf16, #tpu.memory_space<vmem>>, vector<1x16x8xbf16>
    %174 = vector.shape_cast %173 : vector<1x16x8xbf16> to vector<16x8xbf16>
    %c2_114 = arith.constant 2 : index
    %c0_115 = arith.constant 0 : index
    %c0_116 = arith.constant 0 : index
    %175 = vector.load %arg3[%c2_114, %c0_115, %c0_116] : memref<11x8x4xbf16, #tpu.memory_space<vmem>>, vector<1x8x4xbf16>
    %176 = vector.shape_cast %175 : vector<1x8x4xbf16> to vector<8x4xbf16>
    %cst_117 = arith.constant dense<0.000000e+00> : vector<16x4xf32>
    %177 = tpu.matmul %174, %176, %cst_117 {dimension_numbers = #tpu.dot_dimension_numbers<[1], [0], [0], [1], [0, 0, 1, 1], [], []>} : vector<16x8xbf16>, vector<8x4xbf16>, vector<16x4xf32> -> vector<16x4xf32>
    %178 = arith.addf %171, %177 : vector<16x4xf32>
    %179 = arith.index_cast %c1_i32 : i32 to index
    %c6_118 = arith.constant 6 : index
    %c0_119 = arith.constant 0 : index
    %180 = vector.load %arg10[%179, %c6_118, %c0_119] : memref<2x32x8xbf16, #tpu.memory_space<vmem>>, vector<1x16x8xbf16>
    %181 = vector.shape_cast %180 : vector<1x16x8xbf16> to vector<16x8xbf16>
    %c3_120 = arith.constant 3 : index
    %c0_121 = arith.constant 0 : index
    %c0_122 = arith.constant 0 : index
    %182 = vector.load %arg3[%c3_120, %c0_121, %c0_122] : memref<11x8x4xbf16, #tpu.memory_space<vmem>>, vector<1x8x4xbf16>
    %183 = vector.shape_cast %182 : vector<1x8x4xbf16> to vector<8x4xbf16>
    %cst_123 = arith.constant dense<0.000000e+00> : vector<16x4xf32>
    %184 = tpu.matmul %181, %183, %cst_123 {dimension_numbers = #tpu.dot_dimension_numbers<[1], [0], [0], [1], [0, 0, 1, 1], [], []>} : vector<16x8xbf16>, vector<8x4xbf16>, vector<16x4xf32> -> vector<16x4xf32>
    %185 = arith.addf %178, %184 : vector<16x4xf32>
    %186 = arith.index_cast %c1_i32 : i32 to index
    %c7_124 = arith.constant 7 : index
    %c0_125 = arith.constant 0 : index
    %187 = vector.load %arg10[%186, %c7_124, %c0_125] : memref<2x32x8xbf16, #tpu.memory_space<vmem>>, vector<1x16x8xbf16>
    %188 = vector.shape_cast %187 : vector<1x16x8xbf16> to vector<16x8xbf16>
    %c4_126 = arith.constant 4 : index
    %c0_127 = arith.constant 0 : index
    %c0_128 = arith.constant 0 : index
    %189 = vector.load %arg3[%c4_126, %c0_127, %c0_128] : memref<11x8x4xbf16, #tpu.memory_space<vmem>>, vector<1x8x4xbf16>
    %190 = vector.shape_cast %189 : vector<1x8x4xbf16> to vector<8x4xbf16>
    %cst_129 = arith.constant dense<0.000000e+00> : vector<16x4xf32>
    %191 = tpu.matmul %188, %190, %cst_129 {dimension_numbers = #tpu.dot_dimension_numbers<[1], [0], [0], [1], [0, 0, 1, 1], [], []>} : vector<16x8xbf16>, vector<8x4xbf16>, vector<16x4xf32> -> vector<16x4xf32>
    %192 = arith.addf %185, %191 : vector<16x4xf32>
    %193 = arith.index_cast %c1_i32 : i32 to index
    %c8_130 = arith.constant 8 : index
    %c0_131 = arith.constant 0 : index
    %194 = vector.load %arg10[%193, %c8_130, %c0_131] : memref<2x32x8xbf16, #tpu.memory_space<vmem>>, vector<1x16x8xbf16>
    %195 = vector.shape_cast %194 : vector<1x16x8xbf16> to vector<16x8xbf16>
    %c5_132 = arith.constant 5 : index
    %c0_133 = arith.constant 0 : index
    %c0_134 = arith.constant 0 : index
    %196 = vector.load %arg3[%c5_132, %c0_133, %c0_134] : memref<11x8x4xbf16, #tpu.memory_space<vmem>>, vector<1x8x4xbf16>
    %197 = vector.shape_cast %196 : vector<1x8x4xbf16> to vector<8x4xbf16>
    %cst_135 = arith.constant dense<0.000000e+00> : vector<16x4xf32>
    %198 = tpu.matmul %195, %197, %cst_135 {dimension_numbers = #tpu.dot_dimension_numbers<[1], [0], [0], [1], [0, 0, 1, 1], [], []>} : vector<16x8xbf16>, vector<8x4xbf16>, vector<16x4xf32> -> vector<16x4xf32>
    %199 = arith.addf %192, %198 : vector<16x4xf32>
    %200 = arith.index_cast %c1_i32 : i32 to index
    %c9_136 = arith.constant 9 : index
    %c0_137 = arith.constant 0 : index
    %201 = vector.load %arg10[%200, %c9_136, %c0_137] : memref<2x32x8xbf16, #tpu.memory_space<vmem>>, vector<1x16x8xbf16>
    %202 = vector.shape_cast %201 : vector<1x16x8xbf16> to vector<16x8xbf16>
    %c6_138 = arith.constant 6 : index
    %c0_139 = arith.constant 0 : index
    %c0_140 = arith.constant 0 : index
    %203 = vector.load %arg3[%c6_138, %c0_139, %c0_140] : memref<11x8x4xbf16, #tpu.memory_space<vmem>>, vector<1x8x4xbf16>
    %204 = vector.shape_cast %203 : vector<1x8x4xbf16> to vector<8x4xbf16>
    %cst_141 = arith.constant dense<0.000000e+00> : vector<16x4xf32>
    %205 = tpu.matmul %202, %204, %cst_141 {dimension_numbers = #tpu.dot_dimension_numbers<[1], [0], [0], [1], [0, 0, 1, 1], [], []>} : vector<16x8xbf16>, vector<8x4xbf16>, vector<16x4xf32> -> vector<16x4xf32>
    %206 = arith.addf %199, %205 : vector<16x4xf32>
    %207 = arith.index_cast %c1_i32 : i32 to index
    %c10_142 = arith.constant 10 : index
    %c0_143 = arith.constant 0 : index
    %208 = vector.load %arg10[%207, %c10_142, %c0_143] : memref<2x32x8xbf16, #tpu.memory_space<vmem>>, vector<1x16x8xbf16>
    %209 = vector.shape_cast %208 : vector<1x16x8xbf16> to vector<16x8xbf16>
    %c7_144 = arith.constant 7 : index
    %c0_145 = arith.constant 0 : index
    %c0_146 = arith.constant 0 : index
    %210 = vector.load %arg3[%c7_144, %c0_145, %c0_146] : memref<11x8x4xbf16, #tpu.memory_space<vmem>>, vector<1x8x4xbf16>
    %211 = vector.shape_cast %210 : vector<1x8x4xbf16> to vector<8x4xbf16>
    %cst_147 = arith.constant dense<0.000000e+00> : vector<16x4xf32>
    %212 = tpu.matmul %209, %211, %cst_147 {dimension_numbers = #tpu.dot_dimension_numbers<[1], [0], [0], [1], [0, 0, 1, 1], [], []>} : vector<16x8xbf16>, vector<8x4xbf16>, vector<16x4xf32> -> vector<16x4xf32>
    %213 = arith.addf %206, %212 : vector<16x4xf32>
    %214 = arith.index_cast %c1_i32 : i32 to index
    %c11_148 = arith.constant 11 : index
    %c0_149 = arith.constant 0 : index
    %215 = vector.load %arg10[%214, %c11_148, %c0_149] : memref<2x32x8xbf16, #tpu.memory_space<vmem>>, vector<1x16x8xbf16>
    %216 = vector.shape_cast %215 : vector<1x16x8xbf16> to vector<16x8xbf16>
    %c8_150 = arith.constant 8 : index
    %c0_151 = arith.constant 0 : index
    %c0_152 = arith.constant 0 : index
    %217 = vector.load %arg3[%c8_150, %c0_151, %c0_152] : memref<11x8x4xbf16, #tpu.memory_space<vmem>>, vector<1x8x4xbf16>
    %218 = vector.shape_cast %217 : vector<1x8x4xbf16> to vector<8x4xbf16>
    %cst_153 = arith.constant dense<0.000000e+00> : vector<16x4xf32>
    %219 = tpu.matmul %216, %218, %cst_153 {dimension_numbers = #tpu.dot_dimension_numbers<[1], [0], [0], [1], [0, 0, 1, 1], [], []>} : vector<16x8xbf16>, vector<8x4xbf16>, vector<16x4xf32> -> vector<16x4xf32>
    %220 = arith.addf %213, %219 : vector<16x4xf32>
    %221 = arith.index_cast %c1_i32 : i32 to index
    %c12_154 = arith.constant 12 : index
    %c0_155 = arith.constant 0 : index
    %222 = vector.load %arg10[%221, %c12_154, %c0_155] : memref<2x32x8xbf16, #tpu.memory_space<vmem>>, vector<1x16x8xbf16>
    %223 = vector.shape_cast %222 : vector<1x16x8xbf16> to vector<16x8xbf16>
    %c9_156 = arith.constant 9 : index
    %c0_157 = arith.constant 0 : index
    %c0_158 = arith.constant 0 : index
    %224 = vector.load %arg3[%c9_156, %c0_157, %c0_158] : memref<11x8x4xbf16, #tpu.memory_space<vmem>>, vector<1x8x4xbf16>
    %225 = vector.shape_cast %224 : vector<1x8x4xbf16> to vector<8x4xbf16>
    %cst_159 = arith.constant dense<0.000000e+00> : vector<16x4xf32>
    %226 = tpu.matmul %223, %225, %cst_159 {dimension_numbers = #tpu.dot_dimension_numbers<[1], [0], [0], [1], [0, 0, 1, 1], [], []>} : vector<16x8xbf16>, vector<8x4xbf16>, vector<16x4xf32> -> vector<16x4xf32>
    %227 = arith.addf %220, %226 : vector<16x4xf32>
    %228 = arith.index_cast %c1_i32 : i32 to index
    %c13_160 = arith.constant 13 : index
    %c0_161 = arith.constant 0 : index
    %229 = vector.load %arg10[%228, %c13_160, %c0_161] : memref<2x32x8xbf16, #tpu.memory_space<vmem>>, vector<1x16x8xbf16>
    %230 = vector.shape_cast %229 : vector<1x16x8xbf16> to vector<16x8xbf16>
    %c10_162 = arith.constant 10 : index
    %c0_163 = arith.constant 0 : index
    %c0_164 = arith.constant 0 : index
    %231 = vector.load %arg3[%c10_162, %c0_163, %c0_164] : memref<11x8x4xbf16, #tpu.memory_space<vmem>>, vector<1x8x4xbf16>
    %232 = vector.shape_cast %231 : vector<1x8x4xbf16> to vector<8x4xbf16>
    %cst_165 = arith.constant dense<0.000000e+00> : vector<16x4xf32>
    %233 = tpu.matmul %230, %232, %cst_165 {dimension_numbers = #tpu.dot_dimension_numbers<[1], [0], [0], [1], [0, 0, 1, 1], [], []>} : vector<16x8xbf16>, vector<8x4xbf16>, vector<16x4xf32> -> vector<16x4xf32>
    %234 = arith.addf %227, %233 : vector<16x4xf32>
    %235 = arith.truncf %234 : vector<16x4xf32> to vector<16x4xbf16>
    %236 = arith.index_cast %c1_i32 : i32 to index
    %c8_166 = arith.constant 8 : index
    %c0_167 = arith.constant 0 : index
    %237 = vector.load %arg11[%236, %c8_166, %c0_167] : memref<2x32x4xbf16, #tpu.memory_space<vmem>>, vector<1x16x4xbf16>
    %238 = vector.shape_cast %237 : vector<1x16x4xbf16> to vector<16x4xbf16>
    %239 = vector.shape_cast %235 : vector<16x4xbf16> to vector<1x16x4xbf16>
    tpu.vector_store %arg11[%236, %c8_166, %c0_167], %239 {strides = array<i32>} : memref<2x32x4xbf16, #tpu.memory_space<vmem>>, vector<1x16x4xbf16>,
    %c2_i32 = arith.constant 2 : i32
    %c0_168 = arith.constant 0 : index
    %c8_169 = arith.constant 8 : index
    %c0_170 = arith.constant 0 : index
    %240 = vector.load %arg11[%c0_168, %c8_169, %c0_170] : memref<2x32x4xbf16, #tpu.memory_space<vmem>>, vector<2x16x4xbf16>
    %241 = arith.extf %240 : vector<2x16x4xbf16> to vector<2x16x4xf32>
    %cst_171 = arith.constant dense<0.000000e+00> : vector<4xf32>
    %242 = vector.multi_reduction <add>, %241, %cst_171 [0, 1] : vector<2x16x4xf32> to vector<4xf32>
    %243 = vector.shape_cast %242 : vector<4xf32> to vector<1x1x4xf32>
    %cst_172 = arith.constant 3.200000e+01 : f32
    %244 = vector.broadcast %cst_172 : f32 to vector<1x1x4xf32>
    %245 = arith.divf %243, %244 : vector<1x1x4xf32>
    %246 = vector.broadcast %245 : vector<1x1x4xf32> to vector<2x16x4xf32>
    %247 = arith.subf %241, %246 : vector<2x16x4xf32>
    %248 = arith.mulf %247, %247 : vector<2x16x4xf32>
    %cst_173 = arith.constant dense<0.000000e+00> : vector<4xf32>
    %249 = vector.multi_reduction <add>, %248, %cst_173 [0, 1] : vector<2x16x4xf32> to vector<4xf32>
    %250 = vector.shape_cast %249 : vector<4xf32> to vector<1x1x4xf32>
    %cst_174 = arith.constant 3.200000e+01 : f32
    %251 = vector.broadcast %cst_174 : f32 to vector<1x1x4xf32>
    %252 = arith.divf %250, %251 : vector<1x1x4xf32>
    %253 = vector.broadcast %245 : vector<1x1x4xf32> to vector<2x16x4xf32>
    %254 = arith.subf %241, %253 : vector<2x16x4xf32>
    %cst_175 = arith.constant 9.99999974E-6 : f32
    %255 = vector.broadcast %cst_175 : f32 to vector<1x1x4xf32>
    %256 = arith.addf %252, %255 : vector<1x1x4xf32>
    %257 = math.rsqrt %256 : vector<1x1x4xf32>
    %258 = vector.broadcast %257 : vector<1x1x4xf32> to vector<2x16x4xf32>
    %259 = arith.mulf %254, %258 : vector<2x16x4xf32>
    %c0_176 = arith.constant 0 : index
    %c0_177 = arith.constant 0 : index
    %c0_178 = arith.constant 0 : index
    %260 = vector.load %arg5[%c0_176, %c0_177, %c0_178] : memref<1x1x4xf32, #tpu.memory_space<vmem>>, vector<1x1x4xf32>
    %261 = vector.broadcast %260 : vector<1x1x4xf32> to vector<2x16x4xf32>
    %262 = arith.mulf %259, %261 : vector<2x16x4xf32>
    %c0_179 = arith.constant 0 : index
    %c0_180 = arith.constant 0 : index
    %c0_181 = arith.constant 0 : index
    %263 = vector.load %arg6[%c0_179, %c0_180, %c0_181] : memref<1x1x4xf32, #tpu.memory_space<vmem>>, vector<1x1x4xf32>
    %264 = vector.broadcast %263 : vector<1x1x4xf32> to vector<2x16x4xf32>
    %265 = arith.addf %262, %264 : vector<2x16x4xf32>
    %cst_182 = arith.constant 0.000000e+00 : f32
    %266 = vector.broadcast %cst_182 : f32 to vector<2x16x4xf32>
    %267 = arith.cmpf ogt, %265, %266 : vector<2x16x4xf32>
    %cst_183 = arith.constant 0.00999999977 : f32
    %268 = vector.broadcast %cst_183 : f32 to vector<2x16x4xf32>
    %269 = arith.mulf %268, %265 : vector<2x16x4xf32>
    %270 = arith.select %267, %265, %269 : vector<2x16x4xi1>, vector<2x16x4xf32>
    %271 = arith.truncf %270 : vector<2x16x4xf32> to vector<2x16x4xbf16>
    %c0_184 = arith.constant 0 : index
    %c8_185 = arith.constant 8 : index
    %c0_186 = arith.constant 0 : index
    %272 = vector.load %arg11[%c0_184, %c8_185, %c0_186] : memref<2x32x4xbf16, #tpu.memory_space<vmem>>, vector<2x16x4xbf16>
    tpu.vector_store %arg11[%c0_184, %c8_185, %c0_186], %271 {strides = array<i32>} : memref<2x32x4xbf16, #tpu.memory_space<vmem>>, vector<2x16x4xbf16>,
    %c0_i32_187 = arith.constant 0 : i32
    %cst_188 = arith.constant 0.000000e+00 : f32
    %273 = vector.broadcast %cst_188 : f32 to vector<16x4xf32>
    %274 = arith.index_cast %c0_i32_187 : i32 to index
    %c5_189 = arith.constant 5 : index
    %c0_190 = arith.constant 0 : index
    %275 = vector.load %arg11[%274, %c5_189, %c0_190] : memref<2x32x4xbf16, #tpu.memory_space<vmem>>, vector<1x16x4xbf16>
    %276 = vector.shape_cast %275 : vector<1x16x4xbf16> to vector<16x4xbf16>
    %c0_191 = arith.constant 0 : index
    %c0_192 = arith.constant 0 : index
    %c0_193 = arith.constant 0 : index
    %277 = vector.load %arg4[%c0_191, %c0_192, %c0_193] : memref<7x4x4xbf16, #tpu.memory_space<vmem>>, vector<1x4x4xbf16>
    %278 = vector.shape_cast %277 : vector<1x4x4xbf16> to vector<4x4xbf16>
    %cst_194 = arith.constant dense<0.000000e+00> : vector<16x4xf32>
    %279 = tpu.matmul %276, %278, %cst_194 {dimension_numbers = #tpu.dot_dimension_numbers<[1], [0], [0], [1], [0, 0, 1, 1], [], []>} : vector<16x4xbf16>, vector<4x4xbf16>, vector<16x4xf32> -> vector<16x4xf32>
    %280 = arith.addf %273, %279 : vector<16x4xf32>
    %281 = arith.index_cast %c0_i32_187 : i32 to index
    %c6_195 = arith.constant 6 : index
    %c0_196 = arith.constant 0 : index
    %282 = vector.load %arg11[%281, %c6_195, %c0_196] : memref<2x32x4xbf16, #tpu.memory_space<vmem>>, vector<1x16x4xbf16>
    %283 = vector.shape_cast %282 : vector<1x16x4xbf16> to vector<16x4xbf16>
    %c1_197 = arith.constant 1 : index
    %c0_198 = arith.constant 0 : index
    %c0_199 = arith.constant 0 : index
    %284 = vector.load %arg4[%c1_197, %c0_198, %c0_199] : memref<7x4x4xbf16, #tpu.memory_space<vmem>>, vector<1x4x4xbf16>
    %285 = vector.shape_cast %284 : vector<1x4x4xbf16> to vector<4x4xbf16>
    %cst_200 = arith.constant dense<0.000000e+00> : vector<16x4xf32>
    %286 = tpu.matmul %283, %285, %cst_200 {dimension_numbers = #tpu.dot_dimension_numbers<[1], [0], [0], [1], [0, 0, 1, 1], [], []>} : vector<16x4xbf16>, vector<4x4xbf16>, vector<16x4xf32> -> vector<16x4xf32>
    %287 = arith.addf %280, %286 : vector<16x4xf32>
    %288 = arith.index_cast %c0_i32_187 : i32 to index
    %c7_201 = arith.constant 7 : index
    %c0_202 = arith.constant 0 : index
    %289 = vector.load %arg11[%288, %c7_201, %c0_202] : memref<2x32x4xbf16, #tpu.memory_space<vmem>>, vector<1x16x4xbf16>
    %290 = vector.shape_cast %289 : vector<1x16x4xbf16> to vector<16x4xbf16>
    %c2_203 = arith.constant 2 : index
    %c0_204 = arith.constant 0 : index
    %c0_205 = arith.constant 0 : index
    %291 = vector.load %arg4[%c2_203, %c0_204, %c0_205] : memref<7x4x4xbf16, #tpu.memory_space<vmem>>, vector<1x4x4xbf16>
    %292 = vector.shape_cast %291 : vector<1x4x4xbf16> to vector<4x4xbf16>
    %cst_206 = arith.constant dense<0.000000e+00> : vector<16x4xf32>
    %293 = tpu.matmul %290, %292, %cst_206 {dimension_numbers = #tpu.dot_dimension_numbers<[1], [0], [0], [1], [0, 0, 1, 1], [], []>} : vector<16x4xbf16>, vector<4x4xbf16>, vector<16x4xf32> -> vector<16x4xf32>
    %294 = arith.addf %287, %293 : vector<16x4xf32>
    %295 = arith.index_cast %c0_i32_187 : i32 to index
    %c8_207 = arith.constant 8 : index
    %c0_208 = arith.constant 0 : index
    %296 = vector.load %arg11[%295, %c8_207, %c0_208] : memref<2x32x4xbf16, #tpu.memory_space<vmem>>, vector<1x16x4xbf16>
    %297 = vector.shape_cast %296 : vector<1x16x4xbf16> to vector<16x4xbf16>
    %c3_209 = arith.constant 3 : index
    %c0_210 = arith.constant 0 : index
    %c0_211 = arith.constant 0 : index
    %298 = vector.load %arg4[%c3_209, %c0_210, %c0_211] : memref<7x4x4xbf16, #tpu.memory_space<vmem>>, vector<1x4x4xbf16>
    %299 = vector.shape_cast %298 : vector<1x4x4xbf16> to vector<4x4xbf16>
    %cst_212 = arith.constant dense<0.000000e+00> : vector<16x4xf32>
    %300 = tpu.matmul %297, %299, %cst_212 {dimension_numbers = #tpu.dot_dimension_numbers<[1], [0], [0], [1], [0, 0, 1, 1], [], []>} : vector<16x4xbf16>, vector<4x4xbf16>, vector<16x4xf32> -> vector<16x4xf32>
    %301 = arith.addf %294, %300 : vector<16x4xf32>
    %302 = arith.index_cast %c0_i32_187 : i32 to index
    %c9_213 = arith.constant 9 : index
    %c0_214 = arith.constant 0 : index
    %303 = vector.load %arg11[%302, %c9_213, %c0_214] : memref<2x32x4xbf16, #tpu.memory_space<vmem>>, vector<1x16x4xbf16>
    %304 = vector.shape_cast %303 : vector<1x16x4xbf16> to vector<16x4xbf16>
    %c4_215 = arith.constant 4 : index
    %c0_216 = arith.constant 0 : index
    %c0_217 = arith.constant 0 : index
    %305 = vector.load %arg4[%c4_215, %c0_216, %c0_217] : memref<7x4x4xbf16, #tpu.memory_space<vmem>>, vector<1x4x4xbf16>
    %306 = vector.shape_cast %305 : vector<1x4x4xbf16> to vector<4x4xbf16>
    %cst_218 = arith.constant dense<0.000000e+00> : vector<16x4xf32>
    %307 = tpu.matmul %304, %306, %cst_218 {dimension_numbers = #tpu.dot_dimension_numbers<[1], [0], [0], [1], [0, 0, 1, 1], [], []>} : vector<16x4xbf16>, vector<4x4xbf16>, vector<16x4xf32> -> vector<16x4xf32>
    %308 = arith.addf %301, %307 : vector<16x4xf32>
    %309 = arith.index_cast %c0_i32_187 : i32 to index
    %c10_219 = arith.constant 10 : index
    %c0_220 = arith.constant 0 : index
    %310 = vector.load %arg11[%309, %c10_219, %c0_220] : memref<2x32x4xbf16, #tpu.memory_space<vmem>>, vector<1x16x4xbf16>
    %311 = vector.shape_cast %310 : vector<1x16x4xbf16> to vector<16x4xbf16>
    %c5_221 = arith.constant 5 : index
    %c0_222 = arith.constant 0 : index
    %c0_223 = arith.constant 0 : index
    %312 = vector.load %arg4[%c5_221, %c0_222, %c0_223] : memref<7x4x4xbf16, #tpu.memory_space<vmem>>, vector<1x4x4xbf16>
    %313 = vector.shape_cast %312 : vector<1x4x4xbf16> to vector<4x4xbf16>
    %cst_224 = arith.constant dense<0.000000e+00> : vector<16x4xf32>
    %314 = tpu.matmul %311, %313, %cst_224 {dimension_numbers = #tpu.dot_dimension_numbers<[1], [0], [0], [1], [0, 0, 1, 1], [], []>} : vector<16x4xbf16>, vector<4x4xbf16>, vector<16x4xf32> -> vector<16x4xf32>
    %315 = arith.addf %308, %314 : vector<16x4xf32>
    %316 = arith.index_cast %c0_i32_187 : i32 to index
    %c11_225 = arith.constant 11 : index
    %c0_226 = arith.constant 0 : index
    %317 = vector.load %arg11[%316, %c11_225, %c0_226] : memref<2x32x4xbf16, #tpu.memory_space<vmem>>, vector<1x16x4xbf16>
    %318 = vector.shape_cast %317 : vector<1x16x4xbf16> to vector<16x4xbf16>
    %c6_227 = arith.constant 6 : index
    %c0_228 = arith.constant 0 : index
    %c0_229 = arith.constant 0 : index
    %319 = vector.load %arg4[%c6_227, %c0_228, %c0_229] : memref<7x4x4xbf16, #tpu.memory_space<vmem>>, vector<1x4x4xbf16>
    %320 = vector.shape_cast %319 : vector<1x4x4xbf16> to vector<4x4xbf16>
    %cst_230 = arith.constant dense<0.000000e+00> : vector<16x4xf32>
    %321 = tpu.matmul %318, %320, %cst_230 {dimension_numbers = #tpu.dot_dimension_numbers<[1], [0], [0], [1], [0, 0, 1, 1], [], []>} : vector<16x4xbf16>, vector<4x4xbf16>, vector<16x4xf32> -> vector<16x4xf32>
    %322 = arith.addf %315, %321 : vector<16x4xf32>
    %323 = arith.index_cast %c0_i32_187 : i32 to index
    %c0_231 = arith.constant 0 : index
    %c0_232 = arith.constant 0 : index
    %324 = vector.load %arg9[%323, %c0_231, %c0_232] : memref<2x16x4xf32, #tpu.memory_space<vmem>>, vector<1x16x4xf32>
    %325 = vector.shape_cast %324 : vector<1x16x4xf32> to vector<16x4xf32>
    %326 = vector.shape_cast %322 : vector<16x4xf32> to vector<1x16x4xf32>
    tpu.vector_store %arg9[%323, %c0_231, %c0_232], %326 {strides = array<i32>} : memref<2x16x4xf32, #tpu.memory_space<vmem>>, vector<1x16x4xf32>,
    %c1_i32_233 = arith.constant 1 : i32
    %cst_234 = arith.constant 0.000000e+00 : f32
    %327 = vector.broadcast %cst_234 : f32 to vector<16x4xf32>
    %328 = arith.index_cast %c1_i32_233 : i32 to index
    %c5_235 = arith.constant 5 : index
    %c0_236 = arith.constant 0 : index
    %329 = vector.load %arg11[%328, %c5_235, %c0_236] : memref<2x32x4xbf16, #tpu.memory_space<vmem>>, vector<1x16x4xbf16>
    %330 = vector.shape_cast %329 : vector<1x16x4xbf16> to vector<16x4xbf16>
    %c0_237 = arith.constant 0 : index
    %c0_238 = arith.constant 0 : index
    %c0_239 = arith.constant 0 : index
    %331 = vector.load %arg4[%c0_237, %c0_238, %c0_239] : memref<7x4x4xbf16, #tpu.memory_space<vmem>>, vector<1x4x4xbf16>
    %332 = vector.shape_cast %331 : vector<1x4x4xbf16> to vector<4x4xbf16>
    %cst_240 = arith.constant dense<0.000000e+00> : vector<16x4xf32>
    %333 = tpu.matmul %330, %332, %cst_240 {dimension_numbers = #tpu.dot_dimension_numbers<[1], [0], [0], [1], [0, 0, 1, 1], [], []>} : vector<16x4xbf16>, vector<4x4xbf16>, vector<16x4xf32> -> vector<16x4xf32>
    %334 = arith.addf %327, %333 : vector<16x4xf32>
    %335 = arith.index_cast %c1_i32_233 : i32 to index
    %c6_241 = arith.constant 6 : index
    %c0_242 = arith.constant 0 : index
    %336 = vector.load %arg11[%335, %c6_241, %c0_242] : memref<2x32x4xbf16, #tpu.memory_space<vmem>>, vector<1x16x4xbf16>
    %337 = vector.shape_cast %336 : vector<1x16x4xbf16> to vector<16x4xbf16>
    %c1_243 = arith.constant 1 : index
    %c0_244 = arith.constant 0 : index
    %c0_245 = arith.constant 0 : index
    %338 = vector.load %arg4[%c1_243, %c0_244, %c0_245] : memref<7x4x4xbf16, #tpu.memory_space<vmem>>, vector<1x4x4xbf16>
    %339 = vector.shape_cast %338 : vector<1x4x4xbf16> to vector<4x4xbf16>
    %cst_246 = arith.constant dense<0.000000e+00> : vector<16x4xf32>
    %340 = tpu.matmul %337, %339, %cst_246 {dimension_numbers = #tpu.dot_dimension_numbers<[1], [0], [0], [1], [0, 0, 1, 1], [], []>} : vector<16x4xbf16>, vector<4x4xbf16>, vector<16x4xf32> -> vector<16x4xf32>
    %341 = arith.addf %334, %340 : vector<16x4xf32>
    %342 = arith.index_cast %c1_i32_233 : i32 to index
    %c7_247 = arith.constant 7 : index
    %c0_248 = arith.constant 0 : index
    %343 = vector.load %arg11[%342, %c7_247, %c0_248] : memref<2x32x4xbf16, #tpu.memory_space<vmem>>, vector<1x16x4xbf16>
    %344 = vector.shape_cast %343 : vector<1x16x4xbf16> to vector<16x4xbf16>
    %c2_249 = arith.constant 2 : index
    %c0_250 = arith.constant 0 : index
    %c0_251 = arith.constant 0 : index
    %345 = vector.load %arg4[%c2_249, %c0_250, %c0_251] : memref<7x4x4xbf16, #tpu.memory_space<vmem>>, vector<1x4x4xbf16>
    %346 = vector.shape_cast %345 : vector<1x4x4xbf16> to vector<4x4xbf16>
    %cst_252 = arith.constant dense<0.000000e+00> : vector<16x4xf32>
    %347 = tpu.matmul %344, %346, %cst_252 {dimension_numbers = #tpu.dot_dimension_numbers<[1], [0], [0], [1], [0, 0, 1, 1], [], []>} : vector<16x4xbf16>, vector<4x4xbf16>, vector<16x4xf32> -> vector<16x4xf32>
    %348 = arith.addf %341, %347 : vector<16x4xf32>
    %349 = arith.index_cast %c1_i32_233 : i32 to index
    %c8_253 = arith.constant 8 : index
    %c0_254 = arith.constant 0 : index
    %350 = vector.load %arg11[%349, %c8_253, %c0_254] : memref<2x32x4xbf16, #tpu.memory_space<vmem>>, vector<1x16x4xbf16>
    %351 = vector.shape_cast %350 : vector<1x16x4xbf16> to vector<16x4xbf16>
    %c3_255 = arith.constant 3 : index
    %c0_256 = arith.constant 0 : index
    %c0_257 = arith.constant 0 : index
    %352 = vector.load %arg4[%c3_255, %c0_256, %c0_257] : memref<7x4x4xbf16, #tpu.memory_space<vmem>>, vector<1x4x4xbf16>
    %353 = vector.shape_cast %352 : vector<1x4x4xbf16> to vector<4x4xbf16>
    %cst_258 = arith.constant dense<0.000000e+00> : vector<16x4xf32>
    %354 = tpu.matmul %351, %353, %cst_258 {dimension_numbers = #tpu.dot_dimension_numbers<[1], [0], [0], [1], [0, 0, 1, 1], [], []>} : vector<16x4xbf16>, vector<4x4xbf16>, vector<16x4xf32> -> vector<16x4xf32>
    %355 = arith.addf %348, %354 : vector<16x4xf32>
    %356 = arith.index_cast %c1_i32_233 : i32 to index
    %c9_259 = arith.constant 9 : index
    %c0_260 = arith.constant 0 : index
    %357 = vector.load %arg11[%356, %c9_259, %c0_260] : memref<2x32x4xbf16, #tpu.memory_space<vmem>>, vector<1x16x4xbf16>
    %358 = vector.shape_cast %357 : vector<1x16x4xbf16> to vector<16x4xbf16>
    %c4_261 = arith.constant 4 : index
    %c0_262 = arith.constant 0 : index
    %c0_263 = arith.constant 0 : index
    %359 = vector.load %arg4[%c4_261, %c0_262, %c0_263] : memref<7x4x4xbf16, #tpu.memory_space<vmem>>, vector<1x4x4xbf16>
    %360 = vector.shape_cast %359 : vector<1x4x4xbf16> to vector<4x4xbf16>
    %cst_264 = arith.constant dense<0.000000e+00> : vector<16x4xf32>
    %361 = tpu.matmul %358, %360, %cst_264 {dimension_numbers = #tpu.dot_dimension_numbers<[1], [0], [0], [1], [0, 0, 1, 1], [], []>} : vector<16x4xbf16>, vector<4x4xbf16>, vector<16x4xf32> -> vector<16x4xf32>
    %362 = arith.addf %355, %361 : vector<16x4xf32>
    %363 = arith.index_cast %c1_i32_233 : i32 to index
    %c10_265 = arith.constant 10 : index
    %c0_266 = arith.constant 0 : index
    %364 = vector.load %arg11[%363, %c10_265, %c0_266] : memref<2x32x4xbf16, #tpu.memory_space<vmem>>, vector<1x16x4xbf16>
    %365 = vector.shape_cast %364 : vector<1x16x4xbf16> to vector<16x4xbf16>
    %c5_267 = arith.constant 5 : index
    %c0_268 = arith.constant 0 : index
    %c0_269 = arith.constant 0 : index
    %366 = vector.load %arg4[%c5_267, %c0_268, %c0_269] : memref<7x4x4xbf16, #tpu.memory_space<vmem>>, vector<1x4x4xbf16>
    %367 = vector.shape_cast %366 : vector<1x4x4xbf16> to vector<4x4xbf16>
    %cst_270 = arith.constant dense<0.000000e+00> : vector<16x4xf32>
    %368 = tpu.matmul %365, %367, %cst_270 {dimension_numbers = #tpu.dot_dimension_numbers<[1], [0], [0], [1], [0, 0, 1, 1], [], []>} : vector<16x4xbf16>, vector<4x4xbf16>, vector<16x4xf32> -> vector<16x4xf32>
    %369 = arith.addf %362, %368 : vector<16x4xf32>
    %370 = arith.index_cast %c1_i32_233 : i32 to index
    %c11_271 = arith.constant 11 : index
    %c0_272 = arith.constant 0 : index
    %371 = vector.load %arg11[%370, %c11_271, %c0_272] : memref<2x32x4xbf16, #tpu.memory_space<vmem>>, vector<1x16x4xbf16>
    %372 = vector.shape_cast %371 : vector<1x16x4xbf16> to vector<16x4xbf16>
    %c6_273 = arith.constant 6 : index
    %c0_274 = arith.constant 0 : index
    %c0_275 = arith.constant 0 : index
    %373 = vector.load %arg4[%c6_273, %c0_274, %c0_275] : memref<7x4x4xbf16, #tpu.memory_space<vmem>>, vector<1x4x4xbf16>
    %374 = vector.shape_cast %373 : vector<1x4x4xbf16> to vector<4x4xbf16>
    %cst_276 = arith.constant dense<0.000000e+00> : vector<16x4xf32>
    %375 = tpu.matmul %372, %374, %cst_276 {dimension_numbers = #tpu.dot_dimension_numbers<[1], [0], [0], [1], [0, 0, 1, 1], [], []>} : vector<16x4xbf16>, vector<4x4xbf16>, vector<16x4xf32> -> vector<16x4xf32>
    %376 = arith.addf %369, %375 : vector<16x4xf32>
    %377 = arith.index_cast %c1_i32_233 : i32 to index
    %c0_277 = arith.constant 0 : index
    %c0_278 = arith.constant 0 : index
    %378 = vector.load %arg9[%377, %c0_277, %c0_278] : memref<2x16x4xf32, #tpu.memory_space<vmem>>, vector<1x16x4xf32>
    %379 = vector.shape_cast %378 : vector<1x16x4xf32> to vector<16x4xf32>
    %380 = vector.shape_cast %376 : vector<16x4xf32> to vector<1x16x4xf32>
    tpu.vector_store %arg9[%377, %c0_277, %c0_278], %380 {strides = array<i32>} : memref<2x16x4xf32, #tpu.memory_space<vmem>>, vector<1x16x4xf32>,
    %c2_i32_279 = arith.constant 2 : i32
    %c0_280 = arith.constant 0 : index
    %c0_281 = arith.constant 0 : index
    %c0_282 = arith.constant 0 : index
    %381 = vector.load %arg9[%c0_280, %c0_281, %c0_282] : memref<2x16x4xf32, #tpu.memory_space<vmem>>, vector<2x16x4xf32>
    %cst_283 = arith.constant dense<0.000000e+00> : vector<4xf32>
    %382 = vector.multi_reduction <add>, %381, %cst_283 [0, 1] : vector<2x16x4xf32> to vector<4xf32>
    %383 = vector.shape_cast %382 : vector<4xf32> to vector<1x1x4xf32>
    %cst_284 = arith.constant 3.200000e+01 : f32
    %384 = vector.broadcast %cst_284 : f32 to vector<1x1x4xf32>
    %385 = arith.divf %383, %384 : vector<1x1x4xf32>
    %386 = vector.broadcast %385 : vector<1x1x4xf32> to vector<2x16x4xf32>
    %387 = arith.subf %381, %386 : vector<2x16x4xf32>
    %388 = arith.mulf %387, %387 : vector<2x16x4xf32>
    %cst_285 = arith.constant dense<0.000000e+00> : vector<4xf32>
    %389 = vector.multi_reduction <add>, %388, %cst_285 [0, 1] : vector<2x16x4xf32> to vector<4xf32>
    %390 = vector.shape_cast %389 : vector<4xf32> to vector<1x1x4xf32>
    %cst_286 = arith.constant 3.200000e+01 : f32
    %391 = vector.broadcast %cst_286 : f32 to vector<1x1x4xf32>
    %392 = arith.divf %390, %391 : vector<1x1x4xf32>
    %393 = vector.broadcast %385 : vector<1x1x4xf32> to vector<2x16x4xf32>
    %394 = arith.subf %381, %393 : vector<2x16x4xf32>
    %cst_287 = arith.constant 9.99999974E-6 : f32
    %395 = vector.broadcast %cst_287 : f32 to vector<1x1x4xf32>
    %396 = arith.addf %392, %395 : vector<1x1x4xf32>
    %397 = math.rsqrt %396 : vector<1x1x4xf32>
    %398 = vector.broadcast %397 : vector<1x1x4xf32> to vector<2x16x4xf32>
    %399 = arith.mulf %394, %398 : vector<2x16x4xf32>
    %c0_288 = arith.constant 0 : index
    %c0_289 = arith.constant 0 : index
    %c0_290 = arith.constant 0 : index
    %400 = vector.load %arg7[%c0_288, %c0_289, %c0_290] : memref<1x1x4xf32, #tpu.memory_space<vmem>>, vector<1x1x4xf32>
    %401 = vector.broadcast %400 : vector<1x1x4xf32> to vector<2x16x4xf32>
    %402 = arith.mulf %399, %401 : vector<2x16x4xf32>
    %c0_291 = arith.constant 0 : index
    %c0_292 = arith.constant 0 : index
    %c0_293 = arith.constant 0 : index
    %403 = vector.load %arg8[%c0_291, %c0_292, %c0_293] : memref<1x1x4xf32, #tpu.memory_space<vmem>>, vector<1x1x4xf32>
    %404 = vector.broadcast %403 : vector<1x1x4xf32> to vector<2x16x4xf32>
    %405 = arith.addf %402, %404 : vector<2x16x4xf32>
    %cst_294 = arith.constant 0.000000e+00 : f32
    %406 = vector.broadcast %cst_294 : f32 to vector<2x16x4xf32>
    %407 = arith.cmpf ogt, %405, %406 : vector<2x16x4xf32>
    %cst_295 = arith.constant 0.00999999977 : f32
    %408 = vector.broadcast %cst_295 : f32 to vector<2x16x4xf32>
    %409 = arith.mulf %408, %405 : vector<2x16x4xf32>
    %410 = arith.select %407, %405, %409 : vector<2x16x4xi1>, vector<2x16x4xf32>
    %c0_296 = arith.constant 0 : index
    %c0_297 = arith.constant 0 : index
    %c0_298 = arith.constant 0 : index
    %411 = vector.load %arg9[%c0_296, %c0_297, %c0_298] : memref<2x16x4xf32, #tpu.memory_space<vmem>>, vector<2x16x4xf32>
    tpu.vector_store %arg9[%c0_296, %c0_297, %c0_298], %410 {strides = array<i32>} : memref<2x16x4xf32, #tpu.memory_space<vmem>>, vector<2x16x4xf32>,
    return
  }
}

</mosaic_0001>

<bundles_post_ra>
// kernel: up_forward.1
= control target key start
LH: loop header
LB: loop body
LE: loop exit
PB: predicated region body
PF: predicated region fallthrough
CT: control target
= control target key end

     0   :  { %vm65_vm0 = vcmask 1042432   ;;  %vm66_vm1 = vcmask 1043456   ;;  %v3226_v0 = vmov 0.0   ;;  %v3227_v2 = vmov 65535   ;;  %s3770_s1 = inlined_call_operand.vmem [shape: bf16[2,7,4], index: 1, kind: input, shape index: {}]   ;;  %s3771_s2 = inlined_call_operand.vmem [shape: bf16[16,7], index: 2, kind: input, shape index: {}]   ;;  %s3772_s0 = inlined_call_operand.vmem [shape: bf16[2,16,4], index: 0, kind: input, shape index: {}]   ;;  %s3773_s3 = inlined_call_operand.vmem [shape: bf16[11,8,4], index: 3, kind: input, shape index: {}]   ;;  %s3774_s4 = inlined_call_operand.vmem [shape: bf16[7,4,4], index: 4, kind: input, shape index: {}]   ;;  %s3775_s5 = inlined_call_operand.vmem [shape: f32[1,1,4], index: 5, kind: input, shape index: {}]   ;;  %s3776_s6 = inlined_call_operand.vmem [shape: f32[1,1,4], index: 6, kind: input, shape index: {}]   ;;  %s3777_s9 = inlined_call_operand.vmem [shape: f32[2,16,4], index: 9, kind: output, shape index: {}]   ;;  %s3778_s7 = inlined_call_operand.vmem [shape: f32[1,1,4], index: 7, kind: input, shape index: {}]   ;;  %s3779_s8 = inlined_call_operand.vmem [shape: f32[1,1,4], index: 8, kind: input, shape index: {}]  }
   0x1   :  { %2855 = vmatprep.subr.bf16.mxu1 %v3226_v0  ;;  %v55_v1 = vld [vmem:[%s3770_s1] sm:$0xf]  ;;  %v67_v3 = vsel %vm65_vm0, 4294967295, %v3227_v2  ;;  %2927 = vmatprep.subr.bf16.mxu0 %v3226_v0  ;;  %v2723_v4 = vld [vmem:[%s3770_s1 + $0x4] sm:$0xf]  ;;  %vm3228_vm2 = vmmov 0  }
   0x2   :  { %v68_v5 = vsel %vm66_vm1, %v67_v3, 0  ;;  %2857 = vmatprep.mubr.msk.bf16.mxu1 %vm3228_vm2, %v3226_v0  ;;  %2929 = vmatprep.mubr.msk.bf16.mxu0 %vm3228_vm2, %v3226_v0  ;;  %v3216_v8 = vld [vmem:[%s3771_s2] sm:$0xff]   ;;  %vm61_vm3 = vcmask 56320   ;;  %vm37_vm4 = vcmask 27648   ;;  %vm39_vm5 = vcmask 31748  }
   0x3   :  { %v70_v6 = vand.u32 %v68_v5, %v55_v1  ;;  %v868_v7 = vand.u32 %v2723_v4, %v68_v5  ;;  %v3217_v9 = vld [vmem:[%s3771_s2] sm:$0xff]   ;;  %v3229_v10 = vmov 0   ;;  %vm33_vm6 = vcmask 60416   ;;  %v3220_v13 = vld [vmem:[%s3772_s0 + $0x8] ss:$0 sps:$4 sm:$0xff]  }
   0x4   :  { %38 = vst.msk [vmem:[#allocation3] sm:$0xf] %vm37_vm4, %v3229_v10  ;;  %840 = vst.msk [vmem:[#allocation3 + $0x10] sm:$0xf] %vm37_vm4, %v3229_v10  ;;  %v3218_v11 = vld [vmem:[%s3772_s0] ss:$0 sps:$4 sm:$0xff]  }
   0x5   :  { %2856 = vmatpush3.bf16.msra.mxu1 %v70_v6  ;;  %2928 = vmatpush3.bf16.msra.mxu0 %v868_v7  ;;  %40 = vst.msk [vmem:[#allocation3 + $0x8] sm:$0xf0] %vm39_vm5, %v3229_v10  ;;  %841 = vst.msk [vmem:[#allocation3 + $0x18] sm:$0xf0] %vm39_vm5, %v3229_v10  ;;  %v3219_v12 = vld [vmem:[%s3772_s0 + $0x4] ss:$0 sps:$4 sm:$0xff]  }
   0x6   :  { %2861 = vmatprep.subr.bf16.mxu1 %v3226_v0  ;;  %2933 = vmatprep.subr.bf16.mxu0 %v3226_v0  ;;  %51 = vst.msk [vmem:[#allocation2] sm:$0xf0] %vm39_vm5, %v3218_v11  ;;  %v3221_v14 = vld [vmem:[%s3772_s0 + $0xc] ss:$0 sps:$4 sm:$0xff]   ;;  %853 = vst.msk [vmem:[#allocation2 + $0x10] sm:$0xf0] %vm39_vm5, %v3220_v13 }
   0x7   :  { %52 = vst.msk [vmem:[#allocation2 + $0x8] sm:$0xf] %vm37_vm4, %v3219_v12  ;;  %854 = vst.msk [vmem:[#allocation2 + $0x18] sm:$0xf] %vm37_vm4, %v3221_v14  ;;  %v2698_v15 = vld [vmem:[%s3773_s3 + $0x4] sm:$0xf] }
   0x8   :  { %2858 = vmatmul.mubr.msk.bf16.vlgmr.msra.gmra.mrb[0].mxu1 %vm61_vm3, %v3216_v8  ;;  %2930 = vmatmul.mubr.msk.bf16.vlgmr.msra.gmra.mrb[0].mxu0 %vm61_vm3, %v3217_v9  ;;  %34 = vst.msk [vmem:[#allocation2] sm:$0xf] %vm33_vm6, %v3229_v10  ;;  %837 = vst.msk [vmem:[#allocation2 + $0x10] sm:$0xf] %vm33_vm6, %v3229_v10  ;;  %v2726_v16 = vld [vmem:[%s3773_s3 + $0x4] sm:$0xf] }
   0x9   :  { %2863 = vmatprep.mubr.msk.bf16.mxu1 %vm3228_vm2, %v3226_v0  ;;  %2935 = vmatprep.mubr.msk.bf16.mxu0 %vm3228_vm2, %v3226_v0  ;;  %v140_v19 = vsel %vm66_vm1, %v2698_v15, 0  ;;  %v933_v20 = vsel %vm66_vm1, %v2726_v16, 0  ;;  %s3230_s0 = smov 4   ;;  %vm35_vm7 = vcmask 64516   ;;  %vm119_vm8 = vcmask 64548  }
   0xa   :  { %2862 = vmatpush3.bf16.msra.mxu1 %v140_v19  ;;  %2934 = vmatpush3.bf16.msra.mxu0 %v933_v20  ;;  %36 = vst.msk [vmem:[#allocation2 + $0x8] sm:$0xf0] %vm35_vm7, %v3229_v10  ;;  %838 = vst.msk [vmem:[#allocation2 + $0x18] sm:$0xf0] %vm35_vm7, %v3229_v10  ;;  %vm121_vm9 = vcmask 60448   ;;  %vm131_vm10 = vcmask 1045504  }
   0xb   :  { %2867 = vmatprep.subr.bf16.mxu1 %v3226_v0  ;;  %2939 = vmatprep.subr.bf16.mxu0 %v3226_v0  ;;  %v125_v33 = vld [vmem:[%s3773_s3] sm:$0xf]  ;;  %vm135_vm11 = vcmask 64512   ;;  %v2701_v63 = vld [vmem:[%s3773_s3 + $0x8] sm:$0xf]  ;;  %vm323_vm14 = vcmask 1044480  }
   0xc   :  { %v205_v40 = vsel %vm66_vm1, %v125_v33, 0  ;;  %v921_v41 = vld [vmem:[%s3773_s3] sm:$0xf]  ;;  %vm183_vm12 = vsmask.f32 6400  ;;  %v273_v7 = vsel %vm66_vm1, %v2701_v63, 0 }
   0xd   :  { %v997_v50 = vsel %vm66_vm1, %v921_v41, 0  ;;  %v2729_v8 = vld [vmem:[%s3773_s3 + $0x8] sm:$0xf]  ;;  %vm251_vm13 = vsmask.f32 5376  ;;  %vm707_vm7 = vcmask 1041408  }
   0xe   :  { %v1063_v16 = vsel %vm66_vm1, %v2729_v8, 0  ;;  %vm379_vm15 = vsmask.f32 4352  ;;  %vm507_vm3 = vsmask.f32 3328 }
   0xf   :  { %vm635_vm6 = vsmask.f32 2304 }
  0xdb   :  { %v106_v17 = vpop.f32.mrb[0].mxu1  ;;  %v904_v18 = vpop.f32.mrb[0].mxu0 }
  0xdc   :  { %v2859_v21 = vpop.f32.mrb[1].mxu1  ;;  %v2931_v22 = vpop.f32.mrb[1].mxu0 }
  0xdd   :  { %v109_v23 = vpop.f32.mrb[2].mxu1  ;;  %v907_v24 = vpop.f32.mrb[2].mxu0 }
  0xde   :  { %v113_v25 = vpack.c.bf16 %v109_v23, %v106_v17  ;;  %v2860_v26 = vpop.f32.mrb[3].mxu1  ;;  %v911_v27 = vpack.c.bf16 %v907_v24, %v904_v18  ;;  %v2932_v28 = vpop.f32.mrb[3].mxu0 }
  0xe0   :  { %v115_v29 = vrot.slane %v113_v25, 4  ;;  %v913_v30 = vrot.slane %v911_v27, 4 }
  0xe2   :  { %116 = vrot.lane.b32.xlu0 %v115_v29, %s3230_s0  ;;  %v2703_v29 = vld [vmem:[%s3773_s3 + $0xc] sm:$0xf] }
  0xe3   :  { %v331_v33 = vsel %vm66_vm1, %v2703_v29, 0 }
  0xe6   :  { %914 = vrot.lane.b32.xlu0 %v913_v30, %s3230_s0 }
 0x154   :  { %v117_v31 = vpop.permute.xlu0 %116 }
 0x155   :  { %120 = vst.msk [vmem:[#allocation2] sm:$0xf0] %vm119_vm8, %v117_v31 }
 0x156   :  { %122 = vst.msk [vmem:[#allocation2 + $0x8] sm:$0xf] %vm121_vm9, %v117_v31 }
 0x158   :  { %v915_v32 = vpop.permute.xlu0 %914 }
 0x159   :  { %917 = vst.msk [vmem:[#allocation2 + $0x10] sm:$0xf0] %vm119_vm8, %v915_v32  ;;  %vm763_vm8 = vsmask.f32 1280 }
 0x15a   :  { %918 = vst.msk [vmem:[#allocation2 + $0x18] sm:$0xf] %vm121_vm9, %v915_v32  ;;  %vm1630_vm9 = vcmask 31744  }
 0x15c   :  { %v126_v35 = vld [vmem:[#allocation2] sm:$0xfc] }
 0x15d   :  { %v124_v34 = vld [vmem:[#allocation2 + $0x8] sm:$0x3]  ;;  %v123_v36 = vld [vmem:[#allocation2] sm:$0xfe]  ;;  %v132_v37 = vrot.slane %v126_v35, 2  ;;  %v253_v6 = vshrl.u32 %v126_v35, 16 }
 0x15e   :  { %v133_v38 = vrot.slane %v124_v34, 2  ;;  %v185_v39 = vshrl.u32 %v123_v36, 16  ;;  %v188_v42 = vshll.u32 %v123_v36, 16  ;;  %v193_v43 = vshrl.u32 %v124_v34, 16  ;;  %v3358_v5 = vld [vmem:[#allocation2 + $0x8] sm:$0x7] }
 0x15f   :  { %v196_v44 = vshll.u32 %v124_v34, 16  ;;  %v256_v9 = vshll.u32 %v126_v35, 16  ;;  %v261_v10 = vshrl.u32 %v3358_v5, 16  ;;  %v264_v14 = vshll.u32 %v3358_v5, 16 }
 0x160   :  { %v134_v45 = vsel %vm131_vm10, %v132_v37, %v133_v38  ;;  %v922_v47 = vld [vmem:[#allocation2 + $0x10] sm:$0xfc]  ;;  %v187_v51 = vrot.slane %v185_v39, 1  ;;  %v190_v53 = vrot.slane %v188_v42, 2  ;;  %v195_v54 = vrot.slane %v193_v43, 1 }
 0x161   :  { %2864 = vmatmul.mubr.msk.bf16.vlgmr.msra.gmra.mrb[4].mxu1 %vm135_vm11, %v134_v45  ;;  %v920_v46 = vld [vmem:[#allocation2 + $0x18] sm:$0x3]  ;;  %v926_v48 = vrot.slane %v922_v47, 2  ;;  %v919_v52 = vld [vmem:[#allocation2 + $0x10] sm:$0xfe]  ;;  %v198_v55 = vrot.slane %v196_v44, 2 }
 0x162   :  { %2868 = vmatpush3.bf16.msra.mxu1 %v205_v40  ;;  %v927_v49 = vrot.slane %v920_v46, 2  ;;  %2869 = vmatprep.mubr.msk.bf16.mxu1 %vm3228_vm2, %v3226_v0  ;;  %v985_v56 = vshrl.u32 %v920_v46, 16  ;;  %v977_v58 = vshrl.u32 %v919_v52, 16  ;;  %v980_v59 = vshll.u32 %v919_v52, 16  ;;  %v1040_v15 = vld [vmem:[#allocation2 + $0x18] sm:$0x7] }
 0x163   :  { %2873 = vmatprep.subr.bf16.mxu1 %v3226_v0  ;;  %v988_v60 = vshll.u32 %v920_v46, 16  ;;  %v191_v61 = vor.u32 %v190_v53, %v187_v51  ;;  %v199_v62 = vor.u32 %v198_v55, %v195_v54  ;;  %v255_v17 = vrot.slane %v253_v6, 2  ;;  %v2731_v37 = vld [vmem:[%s3773_s3 + $0xc] sm:$0xf]  ;;  %v318_v40 = vld [vmem:[#allocation2] sm:$0xf8] }
 0x164   :  { %v928_v57 = vsel %vm131_vm10, %v926_v48, %v927_v49  ;;  %v979_v1 = vrot.slane %v977_v58, 1  ;;  %v982_v2 = vrot.slane %v980_v59, 2  ;;  %v987_v3 = vrot.slane %v985_v56, 1  ;;  %v1108_v41 = vld [vmem:[#allocation2 + $0x10] sm:$0xf8] }
 0x165   :  { %2936 = vmatmul.mubr.msk.bf16.vlgmr.msra.gmra.mrb[4].mxu0 %vm135_vm11, %v928_v57  ;;  %v990_v4 = vrot.slane %v988_v60, 2  ;;  %v200_v11 = vsel %vm183_vm12, %v191_v61, %v199_v62  ;;  %v258_v18 = vrot.slane %v256_v9, 3  ;;  %v263_v19 = vrot.slane %v261_v10, 2  ;;  %v2705_v44 = vld [vmem:[%s3773_s3 + $0x10] sm:$0xf] }
 0x166   :  { %2940 = vmatpush3.bf16.msra.mxu0 %v997_v50  ;;  %2941 = vmatprep.mubr.msk.bf16.mxu0 %vm3228_vm2, %v3226_v0  ;;  %v983_v12 = vor.u32 %v982_v2, %v979_v1  ;;  %v1043_v20 = vshrl.u32 %v922_v47, 16  ;;  %v1046_v21 = vshll.u32 %v922_v47, 16  ;;  %v266_v23 = vrot.slane %v264_v14, 3  ;;  %v3399_v45 = vld [vmem:[#allocation2 + $0x8] sm:$0xf] }
 0x167   :  { %2945 = vmatprep.subr.bf16.mxu0 %v3226_v0  ;;  %v991_v13 = vor.u32 %v990_v4, %v987_v3  ;;  %v1051_v24 = vshrl.u32 %v1040_v15, 16  ;;  %v1054_v25 = vshll.u32 %v1040_v15, 16  ;;  %v259_v26 = vor.u32 %v258_v18, %v255_v17  ;;  %v2733_v49 = vld [vmem:[%s3773_s3 + $0x10] sm:$0xf]  ;;  %v1164_v55 = vld [vmem:[#allocation2 + $0x18] sm:$0xf] }
 0x168   :  { %v1045_v27 = vrot.slane %v1043_v20, 2  ;;  %v267_v28 = vor.u32 %v266_v23, %v263_v19  ;;  %v1048_v30 = vrot.slane %v1046_v21, 3  ;;  %v1119_v38 = vsel %vm66_vm1, %v2731_v37, 0  ;;  %v2707_v6 = vld [vmem:[%s3773_s3 + $0x14] sm:$0xf] }
 0x169   :  { %v992_v22 = vsel %vm183_vm12, %v983_v12, %v991_v13  ;;  %v1053_v31 = vrot.slane %v1051_v24, 2  ;;  %v1056_v32 = vrot.slane %v1054_v25, 3  ;;  %v324_v42 = vrot.slane %v318_v40, 3  ;;  %v2735_v14 = vld [vmem:[%s3773_s3 + $0x14] sm:$0xf] }
 0x16a   :  { %v268_v34 = vsel %vm251_vm13, %v259_v26, %v267_v28  ;;  %v1049_v35 = vor.u32 %v1048_v30, %v1045_v27  ;;  %v325_v43 = vrot.slane %v3358_v5, 3  ;;  %v1112_v46 = vrot.slane %v1108_v41, 3  ;;  %v446_v17 = vld [vmem:[#allocation2] sm:$0xf0]  ;;  %v1232_v18 = vld [vmem:[#allocation2 + $0x10] sm:$0xf0] }
 0x16b   :  { %v1057_v36 = vor.u32 %v1056_v32, %v1053_v31  ;;  %v1113_v47 = vrot.slane %v1040_v15, 3  ;;  %v401_v48 = vsel %vm66_vm1, %v2705_v44, 0  ;;  %v381_v50 = vshrl.u32 %v318_v40, 16  ;;  %v2709_v21 = vld [vmem:[%s3773_s3 + $0x18] sm:$0xf] }
 0x16c   :  { %v384_v51 = vshll.u32 %v318_v40, 16  ;;  %v389_v52 = vshrl.u32 %v3399_v45, 16  ;;  %v326_v53 = vsel %vm323_vm14, %v324_v42, %v325_v43  ;;  %v392_v54 = vshll.u32 %v3399_v45, 16  ;;  %v2737_v26 = vld [vmem:[%s3773_s3 + $0x18] sm:$0xf] }
 0x16d   :  { %2870 = vmatmul.mubr.msk.bf16.vlgmr.msra.gmra.mrb[4].mxu1 %vm135_vm11, %v200_v11  ;;  %v1058_v39 = vsel %vm251_vm13, %v1049_v35, %v1057_v36  ;;  %v1114_v56 = vsel %vm323_vm14, %v1112_v46, %v1113_v47  ;;  %v1187_v57 = vsel %vm66_vm1, %v2733_v49, 0  ;;  %v383_v58 = vrot.slane %v381_v50, 3  ;;  %v1288_v32 = vld [vmem:[#allocation2 + $0x18] sm:$0x1f] }
 0x16e   :  { %2874 = vmatpush3.bf16.msra.mxu1 %v273_v7  ;;  %2875 = vmatprep.mubr.msk.bf16.mxu1 %vm3228_vm2, %v3226_v0  ;;  %v386_v59 = vrot.slane %v384_v51, 4  ;;  %v391_v60 = vrot.slane %v389_v52, 3  ;;  %v1167_v61 = vshrl.u32 %v1108_v41, 16  ;;  %v394_v62 = vrot.slane %v392_v54, 4  ;;  %v2711_v46 = vld [vmem:[%s3773_s3 + $0x1c] sm:$0xf] }
 0x16f   :  { %2879 = vmatprep.subr.bf16.mxu1 %v3226_v0  ;;  %v1170_v63 = vshll.u32 %v1108_v41, 16  ;;  %v1175_v1 = vshrl.u32 %v1164_v55, 16  ;;  %v1178_v2 = vshll.u32 %v1164_v55, 16  ;;  %v459_v10 = vsel %vm66_vm1, %v2707_v6, 0  ;;  %v2739_v54 = vld [vmem:[%s3773_s3 + $0x1c] sm:$0xf] }
 0x170   :  { %v387_v3 = vor.u32 %v386_v59, %v383_v58  ;;  %v1169_v4 = vrot.slane %v1167_v61, 3  ;;  %v395_v5 = vor.u32 %v394_v62, %v391_v60  ;;  %v1243_v15 = vsel %vm66_vm1, %v2735_v14, 0  ;;  %v1356_v58 = vld [vmem:[#allocation2 + $0x10] sm:$0xe0]  ;;  %v2713_v61 = vld [vmem:[%s3773_s3 + $0x20] sm:$0xf] }
 0x171   :  { %2942 = vmatmul.mubr.msk.bf16.vlgmr.msra.gmra.mrb[4].mxu0 %vm135_vm11, %v992_v22  ;;  %v1172_v7 = vrot.slane %v1170_v63, 4  ;;  %v1177_v8 = vrot.slane %v1175_v1, 3  ;;  %v1180_v9 = vrot.slane %v1178_v2, 4  ;;  %v452_v19 = vrot.slane %v446_v17, 4  ;;  %v3440_v22 = vld [vmem:[#allocation2 + $0x8] sm:$0x1f] }
 0x172   :  { %2946 = vmatpush3.bf16.msra.mxu0 %v1063_v16  ;;  %2947 = vmatprep.mubr.msk.bf16.mxu0 %vm3228_vm2, %v3226_v0  ;;  %v396_v11 = vsel %vm379_vm15, %v387_v3, %v395_v5  ;;  %v453_v20 = vrot.slane %v3399_v45, 4  ;;  %v1236_v23 = vrot.slane %v1232_v18, 4  ;;  %v1237_v24 = vrot.slane %v1164_v55, 4  ;;  %v3481_v62 = vld [vmem:[#allocation2 + $0x8] sm:$0x3f] }
 0x173   :  { %2951 = vmatprep.subr.bf16.mxu0 %v3226_v0  ;;  %v1173_v12 = vor.u32 %v1172_v7, %v1169_v4  ;;  %v1181_v13 = vor.u32 %v1180_v9, %v1177_v8  ;;  %v529_v25 = vsel %vm66_vm1, %v2709_v21, 0  ;;  %v509_v27 = vshrl.u32 %v446_v17, 16  ;;  %v2741_v3 = vld [vmem:[%s3773_s3 + $0x20] sm:$0xf]  ;;  %v1412_v9 = vld [vmem:[#allocation2 + $0x18] sm:$0x3f] }
 0x174   :  { %v512_v28 = vshll.u32 %v446_v17, 16  ;;  %v517_v29 = vshrl.u32 %v3440_v22, 16  ;;  %v454_v30 = vsel %vm66_vm1, %v452_v19, %v453_v20  ;;  %v520_v31 = vshll.u32 %v3440_v22, 16 }
 0x175   :  { %v1182_v16 = vsel %vm379_vm15, %v1173_v12, %v1181_v13  ;;  %v511_v35 = vrot.slane %v509_v27, 4  ;;  %v1294_v40 = vshll.u32 %v1232_v18, 16  ;;  %v1299_v41 = vshrl.u32 %v1288_v32, 16 }
 0x176   :  { %v514_v36 = vrot.slane %v512_v28, 5  ;;  %v519_v37 = vrot.slane %v517_v29, 4  ;;  %v1302_v42 = vshll.u32 %v1288_v32, 16  ;;  %v587_v50 = vsel %vm66_vm1, %v2711_v46, 0 }
 0x177   :  { %v1296_v47 = vrot.slane %v1294_v40, 5  ;;  %v1367_v55 = vsel %vm66_vm1, %v2739_v54, 0  ;;  %v581_v60 = vrot.slane %v3440_v22, 5  ;;  %v1360_v63 = vrot.slane %v1356_v58, 5 }
 0x178   :  { %v515_v43 = vor.u32 %v514_v36, %v511_v35  ;;  %v1304_v49 = vrot.slane %v1302_v42, 5  ;;  %v1361_v1 = vrot.slane %v1288_v32, 5  ;;  %v657_v2 = vsel %vm66_vm1, %v2713_v61, 0  ;;  %v1480_v35 = vld [vmem:[#allocation2 + $0x10] sm:$0xc0] }
 0x179   :  { %2876 = vmatmul.mubr.msk.bf16.vlgmr.msra.gmra.mrb[4].mxu1 %vm135_vm11, %v268_v34  ;;  %v1311_v34 = vsel %vm66_vm1, %v2737_v26, 0  ;;  %v645_v6 = vshrl.u32 %v3481_v62, 16  ;;  %v648_v8 = vshll.u32 %v3481_v62, 16  ;;  %v1418_v17 = vshll.u32 %v1356_v58, 16 }
 0x17a   :  { %2880 = vmatpush3.bf16.msra.mxu1 %v331_v33  ;;  %2881 = vmatprep.mubr.msk.bf16.mxu1 %vm3228_vm2, %v3226_v0  ;;  %v1238_v33 = vsel %vm66_vm1, %v1236_v23, %v1237_v24  ;;  %v1426_v19 = vshll.u32 %v1412_v9, 16  ;;  %v2715_v23 = vld [vmem:[%s3773_s3 + $0x24] sm:$0xf]  ;;  %v1484_v40 = vrot.slane %v1480_v35, 6 }
 0x17b   :  { %2885 = vmatprep.subr.bf16.mxu1 %v3226_v0  ;;  %v647_v14 = vrot.slane %v645_v6, 5  ;;  %v1420_v24 = vrot.slane %v1418_v17, 6  ;;  %v715_v27 = vsel %vm66_vm1, %v2715_v23, 0 }
 0x17c   :  { %v1428_v26 = vrot.slane %v1426_v19, 6 }
 0x17d   :  { %2948 = vmatmul.mubr.msk.bf16.vlgmr.msra.gmra.mrb[4].mxu0 %vm135_vm11, %v1058_v39  ;;  %v522_v39 = vrot.slane %v520_v31, 5  ;;  %v2743_v31 = vld [vmem:[%s3773_s3 + $0x24] sm:$0xf] }
 0x17e   :  { %2952 = vmatpush3.bf16.msra.mxu0 %v1119_v38  ;;  %2953 = vmatprep.mubr.msk.bf16.mxu0 %vm3228_vm2, %v3226_v0  ;;  %v1291_v38 = vshrl.u32 %v1232_v18, 16  ;;  %v1423_v18 = vshrl.u32 %v1412_v9, 16  ;;  %v1491_v32 = vsel %vm66_vm1, %v2743_v31, 0 }
 0x17f   :  { %2957 = vmatprep.subr.bf16.mxu0 %v3226_v0  ;;  %v523_v45 = vor.u32 %v522_v39, %v519_v37  ;;  %v709_v37 = vrot.slane %v3481_v62, 6  ;;  %v760_v39 = vld [vmem:[#allocation2 + $0x8] sm:$0x7f] }
 0x180   :  { %v1293_v44 = vrot.slane %v1291_v38, 4  ;;  %v2717_v38 = vld [vmem:[%s3773_s3 + $0x28] sm:$0xf]  ;;  %v773_v46 = vshrl.u32 %v760_v39, 16 }
 0x181   :  { %v524_v51 = vsel %vm507_vm3, %v515_v43, %v523_v45  ;;  %v785_v42 = vsel %vm66_vm1, %v2717_v38, 0  ;;  %v2745_v43 = vld [vmem:[%s3773_s3 + $0x28] sm:$0xf] }
 0x182   :  { %v1297_v52 = vor.u32 %v1296_v47, %v1293_v44  ;;  %v775_v54 = vrot.slane %v773_v46, 6 }
 0x185   :  { %2882 = vmatmul.mubr.msk.bf16.vlgmr.msra.gmra.mrb[4].mxu1 %vm135_vm11, %v326_v53 }
 0x186   :  { %2886 = vmatpush3.bf16.msra.mxu1 %v401_v48  ;;  %2887 = vmatprep.mubr.msk.bf16.mxu1 %vm3228_vm2, %v3226_v0  ;;  %v1301_v48 = vrot.slane %v1299_v41, 4  ;;  %v1485_v41 = vrot.slane %v1412_v9, 6 }
 0x187   :  { %2891 = vmatprep.subr.bf16.mxu1 %v3226_v0 }
 0x188   :  { %v1305_v53 = vor.u32 %v1304_v49, %v1301_v48  ;;  %v776_v48 = vshll.u32 %v760_v39, 16  ;;  %v1536_v49 = vld [vmem:[#allocation2 + $0x18] sm:$0x7f] }
 0x189   :  { %2954 = vmatmul.mubr.msk.bf16.vlgmr.msra.gmra.mrb[4].mxu0 %vm135_vm11, %v1114_v56 }
 0x18a   :  { %2958 = vmatpush3.bf16.msra.mxu0 %v1187_v57  ;;  %2959 = vmatprep.mubr.msk.bf16.mxu0 %vm3228_vm2, %v3226_v0  ;;  %v1306_v56 = vsel %vm507_vm3, %v1297_v52, %v1305_v53  ;;  %v574_v57 = vld [vmem:[#allocation2] sm:$0xe0] }
 0x18b   :  { %2963 = vmatprep.subr.bf16.mxu0 %v3226_v0  ;;  %v580_v59 = vrot.slane %v574_v57, 5  ;;  %v637_v4 = vshrl.u32 %v574_v57, 16  ;;  %v640_v5 = vshll.u32 %v574_v57, 16  ;;  %v1542_v57 = vshll.u32 %v1480_v35, 16 }
 0x18d   :  { %v582_v7 = vsel %vm65_vm0, %v580_v59, %v581_v60  ;;  %v639_v12 = vrot.slane %v637_v4, 5  ;;  %v642_v13 = vrot.slane %v640_v5, 6  ;;  %v1550_v59 = vshll.u32 %v1536_v49, 16 }
 0x18f   :  { %v643_v20 = vor.u32 %v642_v13, %v639_v12 }
 0x191   :  { %2888 = vmatmul.mubr.msk.bf16.vlgmr.msra.gmra.mrb[4].mxu1 %vm135_vm11, %v396_v11  ;;  %v1435_v11 = vsel %vm66_vm1, %v2741_v3, 0 }
 0x192   :  { %2892 = vmatpush3.bf16.msra.mxu1 %v459_v10  ;;  %2893 = vmatprep.mubr.msk.bf16.mxu1 %vm3228_vm2, %v3226_v0  ;;  %v1362_v10 = vsel %vm65_vm0, %v1360_v63, %v1361_v1  ;;  %v1544_v63 = vrot.slane %v1542_v57, 7 }
 0x193   :  { %2897 = vmatprep.subr.bf16.mxu1 %v3226_v0 }
 0x195   :  { %2960 = vmatmul.mubr.msk.bf16.vlgmr.msra.gmra.mrb[4].mxu0 %vm135_vm11, %v1182_v16  ;;  %v650_v16 = vrot.slane %v648_v8, 6  ;;  %v2762_v8 = vld [vmem:[%s3774_s4 + $0x2] sm:$0x3] }
 0x196   :  { %2964 = vmatpush3.bf16.msra.mxu0 %v1243_v15  ;;  %2965 = vmatprep.mubr.msk.bf16.mxu0 %vm3228_vm2, %v3226_v0  ;;  %v1415_v15 = vshrl.u32 %v1356_v58, 16  ;;  %v1547_v58 = vshrl.u32 %v1536_v49, 16 }
 0x197   :  { %2969 = vmatprep.subr.bf16.mxu0 %v3226_v0  ;;  %v651_v22 = vor.u32 %v650_v16, %v647_v14 }
 0x198   :  { %v1417_v21 = vrot.slane %v1415_v15, 5  ;;  %v1549_v1 = vrot.slane %v1547_v58, 6 }
 0x199   :  { %v652_v28 = vsel %vm635_vm6, %v643_v20, %v651_v22 }
 0x19a   :  { %v1421_v29 = vor.u32 %v1420_v24, %v1417_v21 }
 0x19d   :  { %2894 = vmatmul.mubr.msk.bf16.vlgmr.msra.gmra.mrb[4].mxu1 %vm135_vm11, %v454_v30 }
 0x19e   :  { %2898 = vmatpush3.bf16.msra.mxu1 %v529_v25  ;;  %2899 = vmatprep.mubr.msk.bf16.mxu1 %vm3228_vm2, %v3226_v0  ;;  %v1425_v25 = vrot.slane %v1423_v18, 5 }
 0x19f   :  { %2903 = vmatprep.subr.bf16.mxu1 %v3226_v0 }
 0x1a0   :  { %v1429_v30 = vor.u32 %v1428_v26, %v1425_v25 }
 0x1a1   :  { %2966 = vmatmul.mubr.msk.bf16.vlgmr.msra.gmra.mrb[4].mxu0 %vm135_vm11, %v1238_v33 }
 0x1a2   :  { %2970 = vmatpush3.bf16.msra.mxu0 %v1311_v34  ;;  %2971 = vmatprep.mubr.msk.bf16.mxu0 %vm3228_vm2, %v3226_v0  ;;  %v1430_v33 = vsel %vm635_vm6, %v1421_v29, %v1429_v30  ;;  %v702_v34 = vld [vmem:[#allocation2] sm:$0xc0] }
 0x1a3   :  { %2975 = vmatprep.subr.bf16.mxu0 %v3226_v0  ;;  %v708_v36 = vrot.slane %v702_v34, 6  ;;  %v765_v44 = vshrl.u32 %v702_v34, 16  ;;  %v768_v45 = vshll.u32 %v702_v34, 16 }
 0x1a5   :  { %v710_v47 = vsel %vm707_vm7, %v708_v36, %v709_v37  ;;  %v767_v52 = vrot.slane %v765_v44, 6  ;;  %v770_v53 = vrot.slane %v768_v45, 7 }
 0x1a7   :  { %v771_v60 = vor.u32 %v770_v53, %v767_v52 }
 0x1a9   :  { %2900 = vmatmul.mubr.msk.bf16.vlgmr.msra.gmra.mrb[4].mxu1 %vm135_vm11, %v524_v51  ;;  %v1559_v51 = vsel %vm66_vm1, %v2745_v43, 0 }
 0x1aa   :  { %2904 = vmatpush3.bf16.msra.mxu1 %v587_v50  ;;  %2905 = vmatprep.mubr.msk.bf16.mxu1 %vm3228_vm2, %v3226_v0  ;;  %v1486_v50 = vsel %vm707_vm7, %v1484_v40, %v1485_v41 }
 0x1ab   :  { %2909 = vmatprep.subr.bf16.mxu1 %v3226_v0 }
 0x1ad   :  { %2972 = vmatmul.mubr.msk.bf16.vlgmr.msra.gmra.mrb[4].mxu0 %vm135_vm11, %v1306_v56  ;;  %v778_v56 = vrot.slane %v776_v48, 7 }
 0x1ae   :  { %2976 = vmatpush3.bf16.msra.mxu0 %v1367_v55  ;;  %2977 = vmatprep.mubr.msk.bf16.mxu0 %vm3228_vm2, %v3226_v0  ;;  %v1539_v55 = vshrl.u32 %v1480_v35, 16 }
 0x1af   :  { %2981 = vmatprep.subr.bf16.mxu0 %v3226_v0  ;;  %v779_v62 = vor.u32 %v778_v56, %v775_v54 }
 0x1b0   :  { %v1541_v61 = vrot.slane %v1539_v55, 6 }
 0x1b1   :  { %v780_v3 = vsel %vm763_vm8, %v771_v60, %v779_v62 }
 0x1b2   :  { %v1545_v4 = vor.u32 %v1544_v63, %v1541_v61 }
 0x1b5   :  { %2906 = vmatmul.mubr.msk.bf16.vlgmr.msra.gmra.mrb[4].mxu1 %vm135_vm11, %v582_v7  ;;  %v2749_v7 = vld [vmem:[%s3774_s4 + $0x2] sm:$0x3] }
 0x1b6   :  { %2910 = vmatpush3.bf16.msra.mxu1 %v657_v2  ;;  %2911 = vmatprep.mubr.msk.bf16.mxu1 %vm3228_vm2, %v3226_v0  ;;  %v1552_v2 = vrot.slane %v1550_v59, 7  ;;  %v1736_v9 = vsel %vm707_vm7, %v2749_v7, 0 }
 0x1b7   :  { %2915 = vmatprep.subr.bf16.mxu1 %v3226_v0 }
 0x1b8   :  { %v1553_v5 = vor.u32 %v1552_v2, %v1549_v1 }
 0x1b9   :  { %2978 = vmatmul.mubr.msk.bf16.vlgmr.msra.gmra.mrb[4].mxu0 %vm135_vm11, %v1362_v10  ;;  %v2180_v10 = vsel %vm707_vm7, %v2762_v8, 0 }
 0x1ba   :  { %2982 = vmatpush3.bf16.msra.mxu0 %v1435_v11  ;;  %2983 = vmatprep.mubr.msk.bf16.mxu0 %vm3228_vm2, %v3226_v0  ;;  %v1554_v6 = vsel %vm763_vm8, %v1545_v4, %v1553_v5 }
 0x1bb   :  { %2987 = vmatprep.subr.bf16.mxu0 %v3226_v0 }
 0x1c1   :  { %2912 = vmatmul.mubr.msk.bf16.vlgmr.msra.gmra.mrb[4].mxu1 %vm135_vm11, %v652_v28 }
 0x1c2   :  { %2916 = vmatpush3.bf16.msra.mxu1 %v715_v27  ;;  %2917 = vmatprep.mubr.msk.bf16.mxu1 %vm3228_vm2, %v3226_v0 }
 0x1c3   :  { %2921 = vmatprep.subr.bf16.mxu1 %v3226_v0 }
 0x1c5   :  { %2984 = vmatmul.mubr.msk.bf16.vlgmr.msra.gmra.mrb[4].mxu0 %vm135_vm11, %v1430_v33 }
 0x1c6   :  { %2988 = vmatpush3.bf16.msra.mxu0 %v1491_v32  ;;  %2989 = vmatprep.mubr.msk.bf16.mxu0 %vm3228_vm2, %v3226_v0 }
 0x1c7   :  { %2993 = vmatprep.subr.bf16.mxu0 %v3226_v0 }
 0x1cd   :  { %2918 = vmatmul.mubr.msk.bf16.vlgmr.msra.gmra.mrb[4].mxu1 %vm135_vm11, %v710_v47 }
 0x1ce   :  { %2922 = vmatpush3.bf16.msra.mxu1 %v785_v42  ;;  %2923 = vmatprep.mubr.msk.bf16.mxu1 %vm3228_vm2, %v3226_v0 }
 0x1cf   :  { %2999 = vmatprep.subr.bf16.mxu1 %v3226_v0 }
 0x1d1   :  { %2990 = vmatmul.mubr.msk.bf16.vlgmr.msra.gmra.mrb[4].mxu0 %vm135_vm11, %v1486_v50 }
 0x1d2   :  { %2994 = vmatpush3.bf16.msra.mxu0 %v1559_v51  ;;  %2995 = vmatprep.mubr.msk.bf16.mxu0 %vm3228_vm2, %v3226_v0 }
 0x1d3   :  { %3041 = vmatprep.subr.bf16.mxu0 %v3226_v0 }
 0x1d9   :  { %2924 = vmatmul.mubr.msk.bf16.vlgmr.msra.gmra.mrb[4].mxu1 %vm135_vm11, %v780_v3 }
 0x1da   :  { %3001 = vmatprep.mubr.msk.bf16.mxu1 %vm3228_vm2, %v3226_v0  ;;  %3000 = vmatpush3.bf16.msra.mxu1 %v1736_v9 }
 0x1db   :  { %3005 = vmatprep.subr.bf16.mxu1 %v3226_v0 }
 0x1dd   :  { %2996 = vmatmul.mubr.msk.bf16.vlgmr.msra.gmra.mrb[4].mxu0 %vm135_vm11, %v1554_v6 }
 0x1de   :  { %3043 = vmatprep.mubr.msk.bf16.mxu0 %vm3228_vm2, %v3226_v0  ;;  %3042 = vmatpush3.bf16.msra.mxu0 %v2180_v10 }
 0x1df   :  { %3047 = vmatprep.subr.bf16.mxu0 %v3226_v0 }
 0x2ac   :  { %v821_v11 = vpop.f32.mrb[4].mxu1 }
 0x2ad   :  { %v2925_v12 = vpop.f32.mrb[5].mxu1 }
 0x2ae   :  { %v824_v13 = vpop.f32.mrb[6].mxu1  ;;  %v2747_v12 = vld [vmem:[%s3775_s5] ss:$0 sm:$0xff] }
 0x2af   :  { %v830_v14 = vpack.c.bf16 %v824_v13, %v821_v11  ;;  %v2926_v15 = vpop.f32.mrb[7].mxu1 }
 0x2b0   :  { %v1595_v16 = vpop.f32.mrb[4].mxu0 }
 0x2b1   :  { %v832_v17 = vrot.slane %v830_v14, 4  ;;  %v2997_v18 = vpop.f32.mrb[5].mxu0 }
 0x2b2   :  { %v1598_v19 = vpop.f32.mrb[6].mxu0 }
 0x2b3   :  { %834 = vst.msk [vmem:[#allocation3] sm:$0xf0] %vm39_vm5, %v832_v17  ;;  %v1604_v20 = vpack.c.bf16 %v1598_v19, %v1595_v16  ;;  %v2998_v21 = vpop.f32.mrb[7].mxu0 }
 0x2b4   :  { %835 = vst.msk [vmem:[#allocation3 + $0x8] sm:$0xf] %vm37_vm4, %v832_v17  ;;  %v2748_v17 = vld [vmem:[%s3776_s6] ss:$0 sm:$0xff] }
 0x2b5   :  { %v1606_v22 = vrot.slane %v1604_v20, 4 }
 0x2b7   :  { %1608 = vst.msk [vmem:[#allocation3 + $0x10] sm:$0xf0] %vm39_vm5, %v1606_v22 }
 0x2b8   :  { %1609 = vst.msk [vmem:[#allocation3 + $0x18] sm:$0xf] %vm37_vm4, %v1606_v22 }
 0x2ba   :  { %v1610_v23 = vld [vmem:[#allocation3] sm:$0xf0] }
 0x2bb   :  { %v1611_v24 = vld [vmem:[#allocation3 + $0x8] sm:$0xf]  ;;  %v1618_v25 = vrot.slane %v1610_v23, 4 }
 0x2bc   :  { %v1619_v26 = vrot.slane %v1611_v24, 4 }
 0x2be   :  { %v1620_v27 = vsel %vm66_vm1, %v1618_v25, %v1619_v26  ;;  %v1612_v28 = vld [vmem:[#allocation3 + $0x10] sm:$0xf0] }
 0x2bf   :  { %v1613_v29 = vld [vmem:[#allocation3 + $0x18] sm:$0xf]  ;;  %v1626_v30 = vunpack.c.l.bf16 %v1620_v27  ;;  %v1627_v31 = vunpack.c.h.bf16 %v1620_v27  ;;  %v1621_v32 = vrot.slane %v1612_v28, 4 }
 0x2c0   :  { %v1622_v33 = vrot.slane %v1613_v29, 4 }
 0x2c1   :  { %v1631_v34 = vsel %vm1630_vm9, %v1626_v30, 0.0  ;;  %v1632_v35 = vsel %vm1630_vm9, %v1627_v31, 0.0 }
 0x2c2   :  { %v1623_v36 = vsel %vm66_vm1, %v1621_v32, %v1622_v33  ;;  %v1633_v39 = vadd.f32 %v1632_v35, %v1631_v34 }
 0x2c3   :  { %v1628_v37 = vunpack.c.l.bf16 %v1623_v36  ;;  %v1629_v38 = vunpack.c.h.bf16 %v1623_v36 }
 0x2c5   :  { %v1634_v40 = vsel %vm1630_vm9, %v1628_v37, 0.0  ;;  %v1636_v42 = vsel %vm1630_vm9, %v1629_v38, 0.0 }
 0x2c6   :  { %v1635_v41 = vadd.f32 %v1634_v40, %v1633_v39  ;;  %v2168_v40 = vld [vmem:[%s3774_s4] sm:$0x3] }
 0x2c8   :  { %v1637_v43 = vadd.f32 %v1636_v42, %v1635_v41 }
 0x2ca   :  { %v1638_v44 = vrot.slane %v1637_v43, 4 }
 0x2cc   :  { %v1639_v45 = vadd.f32 %v1638_v44, %v1637_v43 }
 0x2ce   :  { %v1640_v46 = vrot.slane %v1639_v45, 2 }
 0x2d0   :  { %v1641_v47 = vadd.f32 %v1640_v46, %v1639_v45 }
 0x2d2   :  { %v1642_v48 = vrot.slane %v1641_v47, 1 }
 0x2d4   :  { %v1643_v49 = vadd.f32 %v1642_v48, %v1641_v47 }
 0x2d6   :  { %v1645_v50 = vmul.f32 0.03125, %v1643_v49 }
 0x2d8   :  { %v1646_v51 = vsub.f32 %v1626_v30, %v1645_v50  ;;  %v1647_v52 = vsub.f32 %v1627_v31, %v1645_v50  ;;  %v1648_v53 = vsub.f32 %v1628_v37, %v1645_v50  ;;  %v1649_v54 = vsub.f32 %v1629_v38, %v1645_v50  ;;  %v1722_v38 = vld [vmem:[%s3774_s4] sm:$0x3] }
 0x2d9   :  { %v1800_v39 = vsel %vm707_vm7, %v1722_v38, 0  ;;  %v2244_v50 = vsel %vm707_vm7, %v2168_v40, 0  ;;  %v2767_v40 = vld [vmem:[%s3774_s4 + $0x6] sm:$0x3] }
 0x2da   :  { %v1650_v55 = vmul.f32 %v1646_v51, %v1646_v51  ;;  %v1651_v56 = vmul.f32 %v1647_v52, %v1647_v52  ;;  %v1652_v57 = vmul.f32 %v1648_v53, %v1648_v53  ;;  %v1653_v58 = vmul.f32 %v1649_v54, %v1649_v54 }
 0x2dc   :  { %v1654_v59 = vsel %vm1630_vm9, %v1650_v55, 0.0  ;;  %v1655_v60 = vsel %vm1630_vm9, %v1651_v56, 0.0  ;;  %v1657_v62 = vsel %vm1630_vm9, %v1652_v57, 0.0  ;;  %v1659_v1 = vsel %vm1630_vm9, %v1653_v58, 0.0 }
 0x2dd   :  { %v1656_v61 = vadd.f32 %v1655_v60, %v1654_v59 }
 0x2df   :  { %v1658_v63 = vadd.f32 %v1657_v62, %v1656_v61 }
 0x2e1   :  { %v1660_v2 = vadd.f32 %v1659_v1, %v1658_v63 }
 0x2e3   :  { %v1661_v3 = vrot.slane %v1660_v2, 4 }
 0x2e5   :  { %v1662_v4 = vadd.f32 %v1661_v3, %v1660_v2 }
 0x2e7   :  { %v1663_v5 = vrot.slane %v1662_v4, 2 }
 0x2e9   :  { %v1664_v6 = vadd.f32 %v1663_v5, %v1662_v4 }
 0x2eb   :  { %v1665_v7 = vrot.slane %v1664_v6, 1 }
 0x2ed   :  { %v1666_v8 = vadd.f32 %v1665_v7, %v1664_v6 }
 0x2ef   :  { %v1667_v9 = vmul.f32 0.03125, %v1666_v8 }
 0x2f1   :  { %v1668_v10 = vadd.f32 1e-05, %v1667_v9  ;;  %v2752_v9 = vld [vmem:[%s3774_s4 + $0x4] sm:$0x3] }
 0x2f3   :  { %3222 = vrsqrt.f32 %v1668_v10  ;;  %v2765_v10 = vld [vmem:[%s3774_s4 + $0x4] sm:$0x3] }
 0x2fd   :  { %v3223_v11 = vpop.eup %3222 }
 0x2fe   :  { %v1670_v13 = vmul.f32 %v3223_v11, %v1646_v51  ;;  %v1671_v14 = vmul.f32 %v3223_v11, %v1647_v52  ;;  %v1672_v15 = vmul.f32 %v3223_v11, %v1648_v53  ;;  %v1673_v16 = vmul.f32 %v3223_v11, %v1649_v54 }
 0x300   :  { %v1681_v18 = vmul.f32 %v2747_v12, %v1670_v13  ;;  %v1682_v19 = vmul.f32 %v2747_v12, %v1671_v14  ;;  %v1683_v20 = vmul.f32 %v2747_v12, %v1672_v15  ;;  %v1684_v21 = vmul.f32 %v2747_v12, %v1673_v16 }
 0x301   :  { %v1867_v15 = vsel %vm707_vm7, %v2752_v9, 0  ;;  %v2310_v16 = vsel %vm707_vm7, %v2765_v10, 0 }
 0x302   :  { %v1692_v22 = vadd.f32 %v2748_v17, %v1681_v18  ;;  %v1693_v23 = vadd.f32 %v2748_v17, %v1682_v19  ;;  %v1694_v24 = vadd.f32 %v2748_v17, %v1683_v20  ;;  %v1695_v25 = vadd.f32 %v2748_v17, %v1684_v21 }
 0x304   :  { %vm1696_vm10 = vcmp.gt.f32.partialorder %v1692_v22, 0.0  ;;  %vm1697_vm11 = vcmp.gt.f32.partialorder %v1693_v23, 0.0  ;;  %vm1698_vm12 = vcmp.gt.f32.partialorder %v1694_v24, 0.0  ;;  %vm1699_vm8 = vcmp.gt.f32.partialorder %v1695_v25, 0.0 }
 0x305   :  { %v1700_v26 = vmul.f32 0.01, %v1692_v22  ;;  %v1701_v27 = vmul.f32 0.01, %v1693_v23  ;;  %v1702_v28 = vmul.f32 0.01, %v1694_v24 }
 0x306   :  { %v1703_v29 = vmul.f32 0.01, %v1695_v25 }
 0x307   :  { %v1704_v30 = vsel %vm1696_vm10, %v1692_v22, %v1700_v26  ;;  %v1705_v31 = vsel %vm1697_vm11, %v1693_v23, %v1701_v27  ;;  %v1706_v32 = vsel %vm1698_vm12, %v1694_v24, %v1702_v28 }
 0x308   :  { %v1707_v33 = vsel %vm1699_vm8, %v1695_v25, %v1703_v29  ;;  %v1708_v34 = vpack.c.bf16 %v1705_v31, %v1704_v30 }
 0x309   :  { %v1709_v35 = vpack.c.bf16 %v1707_v33, %v1706_v32 }
 0x30a   :  { %v1712_v36 = vrot.slane %v1708_v34, 4 }
 0x30b   :  { %v1713_v37 = vrot.slane %v1709_v35, 4 }
 0x30c   :  { %1716 = vst.msk [vmem:[#allocation3] sm:$0xf0] %vm39_vm5, %v1712_v36 }
 0x30d   :  { %1717 = vst.msk [vmem:[#allocation3 + $0x8] sm:$0xf] %vm37_vm4, %v1712_v36  ;;  %1719 = vst.msk [vmem:[#allocation3 + $0x18] sm:$0xf] %vm37_vm4, %v1713_v37 }
 0x30e   :  { %1718 = vst.msk [vmem:[#allocation3 + $0x10] sm:$0xf0] %vm39_vm5, %v1713_v37  ;;  %v2754_v37 = vld [vmem:[%s3774_s4 + $0x6] sm:$0x3] }
 0x313   :  { %v3584_v42 = vld [vmem:[#allocation3] sm:$0xf8] }
 0x314   :  { %v1721_v41 = vld [vmem:[#allocation3 + $0x8] sm:$0x7]  ;;  %v1720_v43 = vld [vmem:[#allocation3] sm:$0xfc]  ;;  %v1728_v44 = vrot.slane %v3584_v42, 3  ;;  %v1847_v17 = vshrl.u32 %v3584_v42, 16 }
 0x315   :  { %v1729_v45 = vrot.slane %v1721_v41, 3  ;;  %v2167_v46 = vld [vmem:[#allocation3 + $0x18] sm:$0x7]  ;;  %v3587_v47 = vld [vmem:[#allocation3 + $0x10] sm:$0xf8]  ;;  %v1780_v51 = vshrl.u32 %v1720_v43, 16 }
 0x316   :  { %v2173_v48 = vrot.slane %v3587_v47, 3  ;;  %v2174_v49 = vrot.slane %v2167_v46, 3  ;;  %v2166_v52 = vld [vmem:[#allocation3 + $0x10] sm:$0xfc]  ;;  %v1783_v54 = vshll.u32 %v1720_v43, 16  ;;  %v1788_v55 = vshrl.u32 %v1721_v41, 16 }
 0x317   :  { %v1730_v53 = vsel %vm323_vm14, %v1728_v44, %v1729_v45  ;;  %v1791_v56 = vshll.u32 %v1721_v41, 16  ;;  %v2224_v58 = vshrl.u32 %v2166_v52, 16  ;;  %v2227_v59 = vshll.u32 %v2166_v52, 16  ;;  %v3607_v13 = vld [vmem:[#allocation3 + $0x8] sm:$0xf] }
 0x318   :  { %3002 = vmatmul.mubr.msk.bf16.vlgmr.msra.gmra.mrb[8].mxu1 %vm1630_vm9, %v1730_v53  ;;  %v2175_v57 = vsel %vm323_vm14, %v2173_v48, %v2174_v49  ;;  %v2232_v60 = vshrl.u32 %v2167_v46, 16  ;;  %v2235_v61 = vshll.u32 %v2167_v46, 16  ;;  %v1782_v62 = vrot.slane %v1780_v51, 2  ;;  %v3609_v14 = vld [vmem:[#allocation3 + $0x18] sm:$0xf] }
 0x319   :  { %3006 = vmatpush3.bf16.msra.mxu1 %v1800_v39  ;;  %3044 = vmatmul.mubr.msk.bf16.vlgmr.msra.gmra.mrb[8].mxu0 %vm1630_vm9, %v2175_v57  ;;  %v1785_v63 = vrot.slane %v1783_v54, 3  ;;  %v1790_v1 = vrot.slane %v1788_v55, 2  ;;  %v1793_v2 = vrot.slane %v1791_v56, 3  ;;  %v2226_v3 = vrot.slane %v2224_v58, 2  ;;  %v1912_v45 = vld [vmem:[#allocation3] sm:$0xf0] }
 0x31a   :  { %3048 = vmatpush3.bf16.msra.mxu0 %v2244_v50  ;;  %3007 = vmatprep.mubr.msk.bf16.mxu1 %vm3228_vm2, %v3226_v0  ;;  %v2229_v4 = vrot.slane %v2227_v59, 3  ;;  %v2234_v5 = vrot.slane %v2232_v60, 2  ;;  %v2237_v6 = vrot.slane %v2235_v61, 3  ;;  %v1850_v18 = vshll.u32 %v3584_v42, 16  ;;  %v2355_v46 = vld [vmem:[#allocation3 + $0x10] sm:$0xf0] }
 0x31b   :  { %3011 = vmatprep.subr.bf16.mxu1 %v3226_v0  ;;  %3049 = vmatprep.mubr.msk.bf16.mxu0 %vm3228_vm2, %v3226_v0  ;;  %v1786_v7 = vor.u32 %v1785_v63, %v1782_v62  ;;  %v1794_v8 = vor.u32 %v1793_v2, %v1790_v1  ;;  %v1855_v20 = vshrl.u32 %v3607_v13, 16  ;;  %v1858_v21 = vshll.u32 %v3607_v13, 16  ;;  %v2769_v52 = vld [vmem:[%s3774_s4 + $0x8] sm:$0x3]  ;;  %v3657_v54 = vld [vmem:[#allocation3 + $0x18] sm:$0x1f] }
 0x31c   :  { %3053 = vmatprep.subr.bf16.mxu0 %v3226_v0  ;;  %v2230_v11 = vor.u32 %v2229_v4, %v2226_v3  ;;  %v2238_v12 = vor.u32 %v2237_v6, %v2234_v5  ;;  %v2290_v22 = vshrl.u32 %v3587_v47, 16  ;;  %v2293_v24 = vshll.u32 %v3587_v47, 16  ;;  %v2756_v47 = vld [vmem:[%s3774_s4 + $0x8] sm:$0x3] }
 0x31d   :  { %v1795_v19 = vsel %vm251_vm13, %v1786_v7, %v1794_v8  ;;  %v2298_v25 = vshrl.u32 %v3609_v14, 16  ;;  %v2301_v26 = vshll.u32 %v3609_v14, 16  ;;  %v1849_v27 = vrot.slane %v1847_v17, 3  ;;  %v1969_v53 = vld [vmem:[#allocation3 + $0x8] sm:$0x1f] }
 0x31e   :  { %v2239_v23 = vsel %vm251_vm13, %v2230_v11, %v2238_v12  ;;  %v1852_v28 = vrot.slane %v1850_v18, 4  ;;  %v1857_v29 = vrot.slane %v1855_v20, 3  ;;  %v1860_v30 = vrot.slane %v1858_v21, 4  ;;  %v2771_v17 = vld [vmem:[%s3774_s4 + $0xa] sm:$0x3] }
 0x31f   :  { %v2292_v31 = vrot.slane %v2290_v22, 3  ;;  %v2295_v32 = vrot.slane %v2293_v24, 4  ;;  %v2300_v33 = vrot.slane %v2298_v25, 3  ;;  %v2303_v34 = vrot.slane %v2301_v26, 4  ;;  %v2038_v22 = vld [vmem:[#allocation3] sm:$0xe0] }
 0x320   :  { %v1853_v35 = vor.u32 %v1852_v28, %v1849_v27  ;;  %v1861_v36 = vor.u32 %v1860_v30, %v1857_v29  ;;  %v1924_v41 = vsel %vm707_vm7, %v2754_v37, 0  ;;  %v2366_v43 = vsel %vm707_vm7, %v2767_v40, 0  ;;  %v2760_v26 = vld [vmem:[%s3774_s4 + $0xc] sm:$0x3] }
 0x321   :  { %v2296_v38 = vor.u32 %v2295_v32, %v2292_v31  ;;  %v2304_v39 = vor.u32 %v2303_v34, %v2300_v33  ;;  %v1917_v48 = vrot.slane %v1912_v45, 4  ;;  %v1918_v49 = vrot.slane %v3607_v13, 4  ;;  %v2773_v29 = vld [vmem:[%s3774_s4 + $0xc] sm:$0x3]  ;;  %v2535_v31 = vld [vmem:[#allocation3 + $0x18] sm:$0x3f] }
 0x322   :  { %v1862_v42 = vsel %vm379_vm15, %v1853_v35, %v1861_v36  ;;  %v2359_v50 = vrot.slane %v2355_v46, 4  ;;  %v2360_v51 = vrot.slane %v3609_v14, 4  ;;  %v1993_v55 = vsel %vm707_vm7, %v2756_v47, 0  ;;  %v2758_v14 = vld [vmem:[%s3774_s4 + $0xa] sm:$0x3] }
 0x323   :  { %v2305_v44 = vsel %vm379_vm15, %v2296_v38, %v2304_v39  ;;  %v2434_v56 = vsel %vm707_vm7, %v2769_v52, 0  ;;  %v1973_v57 = vshrl.u32 %v1912_v45, 16  ;;  %v1976_v58 = vshll.u32 %v1912_v45, 16  ;;  %v2095_v30 = vld [vmem:[#allocation3 + $0x8] sm:$0x3f] }
 0x324   :  { %3008 = vmatmul.mubr.msk.bf16.vlgmr.msra.gmra.mrb[8].mxu1 %vm1630_vm9, %v1795_v19  ;;  %v1919_v59 = vsel %vm66_vm1, %v1917_v48, %v1918_v49  ;;  %v2361_v60 = vsel %vm66_vm1, %v2359_v50, %v2360_v51  ;;  %v1981_v61 = vshrl.u32 %v1969_v53, 16  ;;  %v1984_v62 = vshll.u32 %v1969_v53, 16 }
 0x325   :  { %3012 = vmatpush3.bf16.msra.mxu1 %v1867_v15  ;;  %3050 = vmatmul.mubr.msk.bf16.vlgmr.msra.gmra.mrb[8].mxu0 %vm1630_vm9, %v2239_v23  ;;  %v2414_v63 = vshrl.u32 %v2355_v46, 16  ;;  %v2417_v1 = vshll.u32 %v2355_v46, 16  ;;  %v2422_v2 = vshrl.u32 %v3657_v54, 16  ;;  %v2425_v3 = vshll.u32 %v3657_v54, 16  ;;  %v2479_v23 = vld [vmem:[#allocation3 + $0x10] sm:$0xe0] }
 0x326   :  { %3054 = vmatpush3.bf16.msra.mxu0 %v2310_v16  ;;  %3013 = vmatprep.mubr.msk.bf16.mxu1 %vm3228_vm2, %v3226_v0  ;;  %v1975_v4 = vrot.slane %v1973_v57, 4  ;;  %v1978_v5 = vrot.slane %v1976_v58, 5  ;;  %v1983_v6 = vrot.slane %v1981_v61, 4  ;;  %v1986_v7 = vrot.slane %v1984_v62, 5 }
 0x327   :  { %3017 = vmatprep.subr.bf16.mxu1 %v3226_v0  ;;  %3055 = vmatprep.mubr.msk.bf16.mxu0 %vm3228_vm2, %v3226_v0  ;;  %v2416_v8 = vrot.slane %v2414_v63, 4  ;;  %v2419_v9 = vrot.slane %v2417_v1, 5  ;;  %v2424_v10 = vrot.slane %v2422_v2, 4  ;;  %v2427_v11 = vrot.slane %v2425_v3, 5 }
 0x328   :  { %3059 = vmatprep.subr.bf16.mxu0 %v3226_v0  ;;  %v1979_v12 = vor.u32 %v1978_v5, %v1975_v4  ;;  %v1987_v13 = vor.u32 %v1986_v7, %v1983_v6  ;;  %v2050_v18 = vsel %vm707_vm7, %v2758_v14, 0  ;;  %v2490_v20 = vsel %vm707_vm7, %v2771_v17, 0 }
 0x329   :  { %v2420_v15 = vor.u32 %v2419_v9, %v2416_v8  ;;  %v2428_v16 = vor.u32 %v2427_v11, %v2424_v10  ;;  %v2043_v24 = vrot.slane %v2038_v22, 5  ;;  %v2044_v25 = vrot.slane %v1969_v53, 5 }
 0x32a   :  { %v1988_v19 = vsel %vm507_vm3, %v1979_v12, %v1987_v13  ;;  %v2483_v27 = vrot.slane %v2479_v23, 5  ;;  %v2484_v28 = vrot.slane %v3657_v54, 5  ;;  %v2119_v33 = vsel %vm707_vm7, %v2760_v26, 0 }
 0x32b   :  { %v2429_v21 = vsel %vm507_vm3, %v2420_v15, %v2428_v16  ;;  %v2045_v32 = vsel %vm65_vm0, %v2043_v24, %v2044_v25  ;;  %v2558_v34 = vsel %vm707_vm7, %v2773_v29, 0  ;;  %v2099_v35 = vshrl.u32 %v2038_v22, 16 }
 0x32c   :  { %v2485_v36 = vsel %vm65_vm0, %v2483_v27, %v2484_v28  ;;  %v2102_v37 = vshll.u32 %v2038_v22, 16  ;;  %v2107_v38 = vshrl.u32 %v2095_v30, 16  ;;  %v2110_v39 = vshll.u32 %v2095_v30, 16 }
 0x32d   :  { %v2538_v40 = vshrl.u32 %v2479_v23, 16 }
 0x32e   :  { %v2104_v45 = vrot.slane %v2102_v37, 6  ;;  %v2109_v46 = vrot.slane %v2107_v38, 5  ;;  %v2112_v47 = vrot.slane %v2110_v39, 6 }
 0x32f   :  { %v2540_v48 = vrot.slane %v2538_v40, 5 }
 0x330   :  { %3014 = vmatmul.mubr.msk.bf16.vlgmr.msra.gmra.mrb[8].mxu1 %vm1630_vm9, %v1862_v42  ;;  %v2546_v42 = vshrl.u32 %v2535_v31, 16  ;;  %v2113_v53 = vor.u32 %v2112_v47, %v2109_v46 }
 0x331   :  { %3018 = vmatpush3.bf16.msra.mxu1 %v1924_v41  ;;  %3056 = vmatmul.mubr.msk.bf16.vlgmr.msra.gmra.mrb[8].mxu0 %vm1630_vm9, %v2305_v44  ;;  %v2541_v41 = vshll.u32 %v2479_v23, 16  ;;  %v2101_v44 = vrot.slane %v2099_v35, 5 }
 0x332   :  { %3060 = vmatpush3.bf16.msra.mxu0 %v2366_v43  ;;  %3019 = vmatprep.mubr.msk.bf16.mxu1 %vm3228_vm2, %v3226_v0  ;;  %v2549_v43 = vshll.u32 %v2535_v31, 16  ;;  %v2548_v50 = vrot.slane %v2546_v42, 5 }
 0x333   :  { %3023 = vmatprep.subr.bf16.mxu1 %v3226_v0  ;;  %3061 = vmatprep.mubr.msk.bf16.mxu0 %vm3228_vm2, %v3226_v0  ;;  %v2543_v49 = vrot.slane %v2541_v41, 6  ;;  %v2105_v52 = vor.u32 %v2104_v45, %v2101_v44  ;;  %v2777_v44 = vld [vmem:[%s3778_s7] ss:$0 sm:$0xff] }
 0x334   :  { %3065 = vmatprep.subr.bf16.mxu0 %v3226_v0  ;;  %v2551_v51 = vrot.slane %v2549_v43, 6 }
 0x335   :  { %v2544_v54 = vor.u32 %v2543_v49, %v2540_v48  ;;  %v2778_v49 = vld [vmem:[%s3779_s8] ss:$0 sm:$0xff] }
 0x33c   :  { %3020 = vmatmul.mubr.msk.bf16.vlgmr.msra.gmra.mrb[8].mxu1 %vm1630_vm9, %v1919_v59 }
 0x33d   :  { %3024 = vmatpush3.bf16.msra.mxu1 %v1993_v55  ;;  %3062 = vmatmul.mubr.msk.bf16.vlgmr.msra.gmra.mrb[8].mxu0 %vm1630_vm9, %v2361_v60  ;;  %v2552_v55 = vor.u32 %v2551_v51, %v2548_v50 }
 0x33e   :  { %3066 = vmatpush3.bf16.msra.mxu0 %v2434_v56  ;;  %3025 = vmatprep.mubr.msk.bf16.mxu1 %vm3228_vm2, %v3226_v0  ;;  %v2114_v56 = vsel %vm635_vm6, %v2105_v52, %v2113_v53 }
 0x33f   :  { %3029 = vmatprep.subr.bf16.mxu1 %v3226_v0  ;;  %3067 = vmatprep.mubr.msk.bf16.mxu0 %vm3228_vm2, %v3226_v0  ;;  %v2553_v57 = vsel %vm635_vm6, %v2544_v54, %v2552_v55 }
 0x340   :  { %3071 = vmatprep.subr.bf16.mxu0 %v3226_v0 }
 0x348   :  { %3026 = vmatmul.mubr.msk.bf16.vlgmr.msra.gmra.mrb[8].mxu1 %vm1630_vm9, %v1988_v19 }
 0x349   :  { %3030 = vmatpush3.bf16.msra.mxu1 %v2050_v18  ;;  %3068 = vmatmul.mubr.msk.bf16.vlgmr.msra.gmra.mrb[8].mxu0 %vm1630_vm9, %v2429_v21 }
 0x34a   :  { %3072 = vmatpush3.bf16.msra.mxu0 %v2490_v20  ;;  %3031 = vmatprep.mubr.msk.bf16.mxu1 %vm3228_vm2, %v3226_v0 }
 0x34b   :  { %3035 = vmatprep.subr.bf16.mxu1 %v3226_v0  ;;  %3073 = vmatprep.mubr.msk.bf16.mxu0 %vm3228_vm2, %v3226_v0 }
 0x34c   :  { %3077 = vmatprep.subr.bf16.mxu0 %v3226_v0 }
 0x354   :  { %3032 = vmatmul.mubr.msk.bf16.vlgmr.msra.gmra.mrb[8].mxu1 %vm1630_vm9, %v2045_v32 }
 0x355   :  { %3036 = vmatpush3.bf16.msra.mxu1 %v2119_v33  ;;  %3074 = vmatmul.mubr.msk.bf16.vlgmr.msra.gmra.mrb[8].mxu0 %vm1630_vm9, %v2485_v36 }
 0x356   :  { %3078 = vmatpush3.bf16.msra.mxu0 %v2558_v34  ;;  %3037 = vmatprep.mubr.msk.bf16.mxu1 %vm3228_vm2, %v3226_v0 }
 0x357   :  { %3079 = vmatprep.mubr.msk.bf16.mxu0 %vm3228_vm2, %v3226_v0 }
 0x360   :  { %3038 = vmatmul.mubr.msk.bf16.vlgmr.msra.gmra.mrb[8].mxu1 %vm1630_vm9, %v2114_v56 }
 0x361   :  { %3080 = vmatmul.mubr.msk.bf16.vlgmr.msra.gmra.mrb[8].mxu0 %vm1630_vm9, %v2553_v57 }
 0x433   :  { %v2155_v0 = vpop.f32.mrb[8].mxu1 }
 0x434   :  { %2164 = vst.msk [vmem:[%s3777_s9] sm:$0xff] %vm1630_vm9, %v2155_v0  ;;  %v2594_v58 = vpop.f32.mrb[8].mxu0  ;;  %v3039_v59 = vpop.f32.mrb[9].mxu1 }
 0x435   :  { %2775 = vst.msk [vmem:[%s3777_s9 + $0x10] sm:$0xff] %vm1630_vm9, %v2594_v58  ;;  %v3081_v60 = vpop.f32.mrb[9].mxu0  ;;  %v2158_v61 = vpop.f32.mrb[10].mxu1 }
 0x436   :  { %2165 = vst.msk [vmem:[%s3777_s9 + $0x8] sm:$0xff] %vm1630_vm9, %v2158_v61  ;;  %v2597_v62 = vpop.f32.mrb[10].mxu0  ;;  %v3040_v63 = vpop.f32.mrb[11].mxu1 }
 0x437   :  { %2776 = vst.msk [vmem:[%s3777_s9 + $0x18] sm:$0xff] %vm1630_vm9, %v2597_v62  ;;  %v3082_v1 = vpop.f32.mrb[11].mxu0 }
 0x43b   :  { %v2606_v2 = vld [vmem:[%s3777_s9] sm:$0xff] }
 0x43c   :  { %v2608_v4 = vld [vmem:[%s3777_s9 + $0x10] sm:$0xff]  ;;  %v2610_v5 = vsel %vm1630_vm9, %v2606_v2, 0.0 }
 0x43d   :  { %v2607_v3 = vld [vmem:[%s3777_s9 + $0x8] sm:$0xff]  ;;  %v2613_v9 = vsel %vm1630_vm9, %v2608_v4, 0.0 }
 0x43e   :  { %v2611_v6 = vsel %vm1630_vm9, %v2607_v3, 0.0  ;;  %v2609_v7 = vld [vmem:[%s3777_s9 + $0x18] sm:$0xff] }
 0x43f   :  { %v2612_v8 = vadd.f32 %v2611_v6, %v2610_v5  ;;  %v2615_v11 = vsel %vm1630_vm9, %v2609_v7, 0.0 }
 0x441   :  { %v2614_v10 = vadd.f32 %v2613_v9, %v2612_v8 }
 0x443   :  { %v2616_v12 = vadd.f32 %v2615_v11, %v2614_v10 }
 0x445   :  { %v2617_v13 = vrot.slane %v2616_v12, 4 }
 0x447   :  { %v2618_v14 = vadd.f32 %v2617_v13, %v2616_v12 }
 0x449   :  { %v2619_v15 = vrot.slane %v2618_v14, 2 }
 0x44b   :  { %v2620_v16 = vadd.f32 %v2619_v15, %v2618_v14 }
 0x44d   :  { %v2621_v17 = vrot.slane %v2620_v16, 1 }
 0x44f   :  { %v2622_v18 = vadd.f32 %v2621_v17, %v2620_v16 }
 0x451   :  { %v2623_v19 = vmul.f32 0.03125, %v2622_v18 }
 0x453   :  { %v2624_v20 = vsub.f32 %v2606_v2, %v2623_v19  ;;  %v2625_v21 = vsub.f32 %v2607_v3, %v2623_v19  ;;  %v2626_v22 = vsub.f32 %v2608_v4, %v2623_v19  ;;  %v2627_v23 = vsub.f32 %v2609_v7, %v2623_v19 }
 0x455   :  { %v2628_v24 = vmul.f32 %v2624_v20, %v2624_v20  ;;  %v2629_v25 = vmul.f32 %v2625_v21, %v2625_v21  ;;  %v2630_v26 = vmul.f32 %v2626_v22, %v2626_v22  ;;  %v2631_v27 = vmul.f32 %v2627_v23, %v2627_v23 }
 0x457   :  { %v2632_v28 = vsel %vm1630_vm9, %v2628_v24, 0.0  ;;  %v2633_v29 = vsel %vm1630_vm9, %v2629_v25, 0.0  ;;  %v2635_v31 = vsel %vm1630_vm9, %v2630_v26, 0.0  ;;  %v2637_v33 = vsel %vm1630_vm9, %v2631_v27, 0.0 }
 0x458   :  { %v2634_v30 = vadd.f32 %v2633_v29, %v2632_v28 }
 0x45a   :  { %v2636_v32 = vadd.f32 %v2635_v31, %v2634_v30 }
 0x45c   :  { %v2638_v34 = vadd.f32 %v2637_v33, %v2636_v32 }
 0x45e   :  { %v2639_v35 = vrot.slane %v2638_v34, 4 }
 0x460   :  { %v2640_v36 = vadd.f32 %v2639_v35, %v2638_v34 }
 0x462   :  { %v2641_v37 = vrot.slane %v2640_v36, 2 }
 0x464   :  { %v2642_v38 = vadd.f32 %v2641_v37, %v2640_v36 }
 0x466   :  { %v2643_v39 = vrot.slane %v2642_v38, 1 }
 0x468   :  { %v2644_v40 = vadd.f32 %v2643_v39, %v2642_v38 }
 0x46a   :  { %v2645_v41 = vmul.f32 0.03125, %v2644_v40 }
 0x46c   :  { %v2646_v42 = vadd.f32 1e-05, %v2645_v41 }
 0x46e   :  { %3224 = vrsqrt.f32 %v2646_v42 }
 0x478   :  { %v3225_v43 = vpop.eup %3224 }
 0x479   :  { %v2648_v45 = vmul.f32 %v3225_v43, %v2624_v20  ;;  %v2649_v46 = vmul.f32 %v3225_v43, %v2625_v21  ;;  %v2650_v47 = vmul.f32 %v3225_v43, %v2626_v22  ;;  %v2651_v48 = vmul.f32 %v3225_v43, %v2627_v23 }
 0x47b   :  { %v2659_v50 = vmul.f32 %v2777_v44, %v2648_v45  ;;  %v2660_v51 = vmul.f32 %v2777_v44, %v2649_v46  ;;  %v2661_v52 = vmul.f32 %v2777_v44, %v2650_v47  ;;  %v2662_v53 = vmul.f32 %v2777_v44, %v2651_v48 }
 0x47d   :  { %v2670_v54 = vadd.f32 %v2778_v49, %v2659_v50  ;;  %v2671_v55 = vadd.f32 %v2778_v49, %v2660_v51  ;;  %v2672_v56 = vadd.f32 %v2778_v49, %v2661_v52  ;;  %v2673_v57 = vadd.f32 %v2778_v49, %v2662_v53 }
 0x47f   :  { %vm2674_vm0 = vcmp.gt.f32.partialorder %v2670_v54, 0.0  ;;  %vm2675_vm1 = vcmp.gt.f32.partialorder %v2671_v55, 0.0  ;;  %vm2676_vm2 = vcmp.gt.f32.partialorder %v2672_v56, 0.0  ;;  %vm2677_vm4 = vcmp.gt.f32.partialorder %v2673_v57, 0.0 }
 0x480   :  { %v2678_v0 = vmul.f32 0.01, %v2670_v54  ;;  %v2679_v58 = vmul.f32 0.01, %v2671_v55  ;;  %v2680_v59 = vmul.f32 0.01, %v2672_v56 }
 0x481   :  { %v2681_v60 = vmul.f32 0.01, %v2673_v57 }
 0x482   :  { %v2682_v61 = vsel %vm2674_vm0, %v2670_v54, %v2678_v0  ;;  %v2683_v62 = vsel %vm2675_vm1, %v2671_v55, %v2679_v58  ;;  %v2684_v63 = vsel %vm2676_vm2, %v2672_v56, %v2680_v59 }
 0x483   :  { %v2685_v1 = vsel %vm2677_vm4, %v2673_v57, %v2681_v60  ;;  %2686 = vst.msk [vmem:[%s3777_s9] sm:$0xff] %vm1630_vm9, %v2682_v61  ;;  %2687 = vst.msk [vmem:[%s3777_s9 + $0x8] sm:$0xff] %vm1630_vm9, %v2683_v62 }
 0x484   :  { %2688 = vst.msk [vmem:[%s3777_s9 + $0x10] sm:$0xff] %vm1630_vm9, %v2684_v63  ;;  %2689 = vst.msk [vmem:[%s3777_s9 + $0x18] sm:$0xff] %vm1630_vm9, %v2685_v1 }

</bundles_post_ra>
